<compile_context>
chip_gen: v7x
topology: tpu7x:2x2x1
jax: 0.10.0
libtpu: 0.0.40
codegen_flags: <defaults>
</compile_context>

<pallas_src>
import functools
import math

import jax
import jax.numpy as jnp
from jax import lax
from jax.experimental import pallas as pl
from jax.experimental.pallas import tpu as pltpu

_PACK = 128  # lane-dense packed-stats width: lane 0 = action, 1 = log_prob, 2 = entropy
# NOTE: only 3 of the 128 lanes carry data; at rollout-scale B*n_agents the stats write
# stream dominates HBM writeback. TODO(synk): pack several rows' stats per 128-lane row
# (or emit bf16 stats) before shrinking _PACK below 128 (which reintroduces masked vst).


# ----------------------------------------------------------------------------
# Pallas kernel: single invocation, all agents processed with resident weights.
# ----------------------------------------------------------------------------
def _rnn_ns_agent_kernel(x_ref, h_ref,
                         w1_ref, b1_ref,
                         wih_ref, whh_ref, bih_ref, bhh_ref,
                         w2_ref, b2_ref,
                         hout_ref, stats_ref):
    # x_ref  : [B, n_agents, Din]  bf16     h_ref  : [B, n_agents, H]   f32
    # w1_ref : [n_agents, Din, H]  bf16     b1_ref : [n_agents, 1, H]   f32
    # wih_ref: [n_agents, H, 3H]   bf16     bih_ref: [n_agents, 1, 3H]  f32  (cols [r|z|n])
    # whh_ref: [n_agents, H, 3H]   bf16     bhh_ref: [n_agents, 1, 3H]  f32  (cols [r|z|n])
    # w2_ref : [n_agents, H, A]    bf16     b2_ref : [n_agents, 1, A]   f32
    # hout_ref : [B, n_agents, H]  f32      stats_ref: [B, n_agents, _PACK] f32
    n_agents = w1_ref.shape[0]
    H = h_ref.shape[-1]
    A = b2_ref.shape[-1]
    B = x_ref.shape[0]
    PACK = stats_ref.shape[-1]

    x_all = x_ref[...]            # [B, n_agents, Din] bf16
    h_all = h_ref[...]            # [B, n_agents, H]   f32

    # Constants hoisted out of the agent loop (JAX does not CSE broadcasts/iotas).
    act_idx = lax.broadcasted_iota(jnp.int32, (B, A), 1)
    lane_idx = lax.broadcasted_iota(jnp.int32, (B, PACK), 1)

    for a in range(n_agents):     # static unroll: all agents' weights stay resident in VMEM
        x = x_all[:, a, :]        # [B, Din] bf16 (MXU operand)
        h = h_all[:, a, :]        # [B, H]   f32  (kept f32 for the gate blend)

        # fc1 + ReLU (f32 accumulate).
        y = jnp.dot(x, w1_ref[a], preferred_element_type=jnp.float32) + b1_ref[a]
        y = jnp.maximum(y, 0.0)

        # GRU cell (torch semantics): two [B,H] x [H,3H] matmuls, f32 pointwise math.
        gx = jnp.dot(y.astype(jnp.bfloat16), wih_ref[a],
                     preferred_element_type=jnp.float32) + bih_ref[a]          # [B, 3H]
        gh = jnp.dot(h.astype(jnp.bfloat16), whh_ref[a],
                     preferred_element_type=jnp.float32) + bhh_ref[a]          # [B, 3H]
        rz = jax.nn.sigmoid(gx[:, :2 * H] + gh[:, :2 * H])   # one EUP push over the 2H slab
        r = rz[:, :H]
        z = rz[:, H:]
        # torch GRUCell: n = tanh(W_in y + b_in + r * (W_hn h + b_hn))
        n = jnp.tanh(gx[:, 2 * H:] + r * gh[:, 2 * H:])
        h_new = (1.0 - z) * n + z * h                                          # [B, H] f32

        # fc2 -> logits.
        logits = jnp.dot(h_new.astype(jnp.bfloat16), w2_ref[a],
                         preferred_element_type=jnp.float32) + b2_ref[a]       # [B, A]

        # Softmax statistics. The greedy action's logit equals the max, so its log-prob is
        # exactly -log(sum(exp(logits - max))): no one-hot gather needed. Entropy is
        # log(s) - sum(e*shift)/s, reusing e and shift (approx reciprocal -> EUP slot).
        m = jnp.max(logits, axis=-1, keepdims=True)
        shift = logits - m
        e = jnp.exp(shift)
        s = jnp.sum(e, axis=-1, keepdims=True)
        log_s = jnp.log(s)
        inv_s = pl.reciprocal(s, approx=True)
        entropy = log_s - jnp.sum(e * shift, axis=-1, keepdims=True) * inv_s   # [B, 1]
        logp = -log_s                                                          # [B, 1]

        # Greedy action = first index attaining the max (matches torch argmax tie-break).
        action = jnp.min(jnp.where(logits >= m, act_idx, A), axis=-1, keepdims=True)

        # Pack the three per-row scalars into one lane-dense 128-wide row.
        # (action round-trips through f32: exact while n_actions < 2^24.)
        packed = jnp.where(lane_idx == 0, action.astype(jnp.float32),
                           jnp.where(lane_idx == 1, logp,
                                     jnp.where(lane_idx == 2, entropy, 0.0)))  # [B, PACK]

        # Store directly: no per-agent temporaries kept live across the unrolled loop,
        # no big interleaving stack copy in the epilogue.
        hout_ref[:, a, :] = h_new
        stats_ref[:, a, :] = packed


# ----------------------------------------------------------------------------
# pallas_call wrapper (no grid: one invocation, whole arrays resident in VMEM).
# ----------------------------------------------------------------------------
def _run_agents(x, h, params):
    B, n_agents, _ = x.shape
    H = h.shape[-1]
    args = (x.astype(jnp.bfloat16), h.astype(jnp.float32),
            params["w1"], params["b1"],
            params["wih"], params["whh"], params["bih"], params["bhh"],
            params["w2"], params["b2"])
    out_shape = (
        jax.ShapeDtypeStruct((B, n_agents, H), jnp.float32),
        jax.ShapeDtypeStruct((B, n_agents, _PACK), jnp.float32),
    )
    # VMEM budget from the actual resident footprint (inputs + weights + outputs), with
    # headroom; capped at v7x's 64 MiB physical so one config works on all generations.
    # TODO(synk): if n_agents*(6H^2 + Din*H + H*A)*2B approaches this budget, switch to a
    # grid=(n_agents,) that streams per-agent weight blocks instead of whole-array residency.
    io_bytes = sum(int(a.size) * a.dtype.itemsize for a in args)
    io_bytes += sum(math.prod(o.shape) * o.dtype.itemsize for o in out_shape)
    vmem_limit = int(min(max(2 * io_bytes + (4 << 20), 16 << 20), 64 << 20))
    return pl.pallas_call(
        _rnn_ns_agent_kernel,
        out_shape=out_shape,
        input_output_aliases={1: 0},   # hidden state updated in place (h -> hout)
        compiler_params=pltpu.CompilerParams(vmem_limit_bytes=vmem_limit),
    )(*args)


# ----------------------------------------------------------------------------
# RNNNSAgent.forward (both branches of the torch code) — zero wrapper transposes.
# ----------------------------------------------------------------------------
@functools.partial(jax.jit, static_argnums=(3, 4))
def rnn_ns_agent_forward(inputs, hidden_state, params, n_agents, input_shape):
    if inputs.ndim == 2 and inputs.shape[0] == n_agents:
        # branch 1: inputs [n_agents, Din], hidden [1, n_agents, H]
        x = inputs[None]                                  # [1, n_agents, Din] (free reshape)
        hout, stats = _run_agents(x, hidden_state, params)
        actions = stats[0, :, 0:1].astype(jnp.int32)      # [n_agents, 1]
        log_probs = stats[0, :, 1:2]
        es = stats[0, :, 2:3]
        return actions, log_probs, es, hout               # hout already [1, n_agents, H]
    else:
        # branch 2: inputs [B*n_agents, Din], hidden [B, n_agents, H]
        B = inputs.shape[0] // n_agents
        x = inputs.reshape(B, n_agents, input_shape)      # contiguous view, no transpose
        hout, stats = _run_agents(x, hidden_state, params)
        actions = stats[:, :, 0].reshape(-1, 1).astype(jnp.int32)   # [B*n_agents, 1]
        log_probs = stats[:, :, 1].reshape(-1, 1)
        es = stats[:, :, 2].reshape(-1, 1)
        return actions, log_probs, es, hout               # hout [B, n_agents, H]


# ----------------------------------------------------------------------------
# Parameter init (torch nn.Linear / GRUCell shapes, stored transposed) + prep.
# ----------------------------------------------------------------------------
def init_params(key, n_agents, input_shape, hidden_dim, n_actions):
    ks = jax.random.split(key, 8)

    def u(k, shape, fan_in):
        bound = 1.0 / jnp.sqrt(jnp.float32(fan_in))
        return jax.random.uniform(k, shape, jnp.float32, -bound, bound)

    return dict(
        w1=u(ks[0], (n_agents, input_shape, hidden_dim), input_shape),
        b1=u(ks[1], (n_agents, 1, hidden_dim), input_shape),
        wih=u(ks[2], (n_agents, hidden_dim, 3 * hidden_dim), hidden_dim),  # cols [r|z|n]
        whh=u(ks[3], (n_agents, hidden_dim, 3 * hidden_dim), hidden_dim),  # cols [r|z|n]
        bih=u(ks[4], (n_agents, 1, 3 * hidden_dim), hidden_dim),
        bhh=u(ks[5], (n_agents, 1, 3 * hidden_dim), hidden_dim),
        w2=u(ks[6], (n_agents, hidden_dim, n_actions), hidden_dim),
        b2=u(ks[7], (n_agents, 1, n_actions), hidden_dim),
    )


def prepare_params(p):
    """Cast the matmul weights to bf16 once on the host (halves the dominant HBM->VMEM
    weight stream, native MXU path on v5e/v6e/v7x). Biases stay f32: they are added after
    the f32-accumulating dot, and all VPU/EUP gate math remains f32."""
    bf = lambda w: w.astype(jnp.bfloat16)
    return dict(w1=bf(p["w1"]), b1=p["b1"],
                wih=bf(p["wih"]), whh=bf(p["whh"]), bih=p["bih"], bhh=p["bhh"],
                w2=bf(p["w2"]), b2=p["b2"])


if __name__ == "__main__":
    n_agents, input_shape, hidden_dim, n_actions, B = 3, 16, 32, 8, 2
    # TODO(synk): padding hidden_dim / n_actions to multiples of 128 in the model config
    # would make every gate slice vreg-aligned and remove the masked VPU ops at H=32.

    key = jax.random.PRNGKey(0)
    kp, kx1, kx2 = jax.random.split(key, 3)
    params = prepare_params(init_params(kp, n_agents, input_shape, hidden_dim, n_actions))

    # batched branch: inputs [B*n_agents, Din], hidden [B, n_agents, H]
    inputs_b = jax.random.normal(kx1, (B * n_agents, input_shape), jnp.float32)
    hidden_b = jnp.zeros((B, n_agents, hidden_dim), jnp.float32)
    out_b = rnn_ns_agent_forward(inputs_b, hidden_b, params, n_agents, input_shape)
    jax.block_until_ready(out_b)

    # per-agent branch: inputs [n_agents, Din], hidden [1, n_agents, H]
    inputs_a = jax.random.normal(kx2, (n_agents, input_shape), jnp.float32)
    hidden_a = jnp.zeros((1, n_agents, hidden_dim), jnp.float32)
    out_a = rnn_ns_agent_forward(inputs_a, hidden_a, params, n_agents, input_shape)
    jax.block_until_ready(out_a)

    print("KERNEL_OK")
</pallas_src>

<mosaic_0001>
module attributes {stable_mosaic.version = 11 : i64} {
  func.func @_rnn_ns_agent_kernel(%arg0: memref<2x3x16xbf16, #tpu.memory_space<vmem>>, %arg1: memref<2x3x32xf32, #tpu.memory_space<vmem>>, %arg2: memref<3x16x32xbf16, #tpu.memory_space<vmem>>, %arg3: memref<3x1x32xf32, #tpu.memory_space<vmem>>, %arg4: memref<3x32x96xbf16, #tpu.memory_space<vmem>>, %arg5: memref<3x32x96xbf16, #tpu.memory_space<vmem>>, %arg6: memref<3x1x96xf32, #tpu.memory_space<vmem>>, %arg7: memref<3x1x96xf32, #tpu.memory_space<vmem>>, %arg8: memref<3x32x8xbf16, #tpu.memory_space<vmem>>, %arg9: memref<3x1x8xf32, #tpu.memory_space<vmem>>, %arg10: memref<2x3x32xf32, #tpu.memory_space<vmem>>, %arg11: memref<2x3x128xf32, #tpu.memory_space<vmem>>) attributes {dimension_semantics = [], scalar_prefetch = 0 : i64, scratch_operands = 0 : i64, tpu.core_type = #tpu.core_type<tc>} {
    %c0 = arith.constant 0 : index
    %c0_0 = arith.constant 0 : index
    %c0_1 = arith.constant 0 : index
    %0 = vector.load %arg0[%c0, %c0_0, %c0_1] : memref<2x3x16xbf16, #tpu.memory_space<vmem>>, vector<2x3x16xbf16>
    %c0_2 = arith.constant 0 : index
    %c0_3 = arith.constant 0 : index
    %c0_4 = arith.constant 0 : index
    %1 = vector.load %arg1[%c0_2, %c0_3, %c0_4] : memref<2x3x32xf32, #tpu.memory_space<vmem>>, vector<2x3x32xf32>
    %2 = tpu.iota {dimensions = array<i32: 1>} : vector<2x8xi32>
    %3 = tpu.iota {dimensions = array<i32: 1>} : vector<2x128xi32>
    %4 = vector.extract_strided_slice %0 {offsets = [0, 0, 0], sizes = [2, 1, 16], strides = [1, 1, 1]} : vector<2x3x16xbf16> to vector<2x1x16xbf16>
    %5 = vector.shape_cast %4 : vector<2x1x16xbf16> to vector<2x16xbf16>
    %6 = vector.extract_strided_slice %1 {offsets = [0, 0, 0], sizes = [2, 1, 32], strides = [1, 1, 1]} : vector<2x3x32xf32> to vector<2x1x32xf32>
    %7 = vector.shape_cast %6 : vector<2x1x32xf32> to vector<2x32xf32>
    %c0_5 = arith.constant 0 : index
    %c0_6 = arith.constant 0 : index
    %c0_7 = arith.constant 0 : index
    %8 = vector.load %arg2[%c0_5, %c0_6, %c0_7] : memref<3x16x32xbf16, #tpu.memory_space<vmem>>, vector<1x16x32xbf16>
    %9 = vector.shape_cast %8 : vector<1x16x32xbf16> to vector<16x32xbf16>
    %cst = arith.constant dense<0.000000e+00> : vector<2x32xf32>
    %10 = tpu.matmul %5, %9, %cst {dimension_numbers = #tpu.dot_dimension_numbers<[1], [0], [0], [1], [0, 0, 1, 1], [], []>} : vector<2x16xbf16>, vector<16x32xbf16>, vector<2x32xf32> -> vector<2x32xf32>
    %c0_8 = arith.constant 0 : index
    %c0_9 = arith.constant 0 : index
    %c0_10 = arith.constant 0 : index
    %11 = vector.load %arg3[%c0_8, %c0_9, %c0_10] : memref<3x1x32xf32, #tpu.memory_space<vmem>>, vector<1x1x32xf32>
    %12 = vector.shape_cast %11 : vector<1x1x32xf32> to vector<1x32xf32>
    %13 = vector.broadcast %12 : vector<1x32xf32> to vector<2x32xf32>
    %14 = arith.addf %10, %13 : vector<2x32xf32>
    %cst_11 = arith.constant 0.000000e+00 : f32
    %15 = vector.broadcast %cst_11 : f32 to vector<2x32xf32>
    %16 = arith.maximumf %14, %15 : vector<2x32xf32>
    %17 = arith.truncf %16 : vector<2x32xf32> to vector<2x32xbf16>
    %c0_12 = arith.constant 0 : index
    %c0_13 = arith.constant 0 : index
    %c0_14 = arith.constant 0 : index
    %18 = vector.load %arg4[%c0_12, %c0_13, %c0_14] : memref<3x32x96xbf16, #tpu.memory_space<vmem>>, vector<1x32x96xbf16>
    %19 = vector.shape_cast %18 : vector<1x32x96xbf16> to vector<32x96xbf16>
    %cst_15 = arith.constant dense<0.000000e+00> : vector<2x96xf32>
    %20 = tpu.matmul %17, %19, %cst_15 {dimension_numbers = #tpu.dot_dimension_numbers<[1], [0], [0], [1], [0, 0, 1, 1], [], []>} : vector<2x32xbf16>, vector<32x96xbf16>, vector<2x96xf32> -> vector<2x96xf32>
    %c0_16 = arith.constant 0 : index
    %c0_17 = arith.constant 0 : index
    %c0_18 = arith.constant 0 : index
    %21 = vector.load %arg6[%c0_16, %c0_17, %c0_18] : memref<3x1x96xf32, #tpu.memory_space<vmem>>, vector<1x1x96xf32>
    %22 = vector.shape_cast %21 : vector<1x1x96xf32> to vector<1x96xf32>
    %23 = vector.broadcast %22 : vector<1x96xf32> to vector<2x96xf32>
    %24 = arith.addf %20, %23 : vector<2x96xf32>
    %25 = arith.truncf %7 : vector<2x32xf32> to vector<2x32xbf16>
    %c0_19 = arith.constant 0 : index
    %c0_20 = arith.constant 0 : index
    %c0_21 = arith.constant 0 : index
    %26 = vector.load %arg5[%c0_19, %c0_20, %c0_21] : memref<3x32x96xbf16, #tpu.memory_space<vmem>>, vector<1x32x96xbf16>
    %27 = vector.shape_cast %26 : vector<1x32x96xbf16> to vector<32x96xbf16>
    %cst_22 = arith.constant dense<0.000000e+00> : vector<2x96xf32>
    %28 = tpu.matmul %25, %27, %cst_22 {dimension_numbers = #tpu.dot_dimension_numbers<[1], [0], [0], [1], [0, 0, 1, 1], [], []>} : vector<2x32xbf16>, vector<32x96xbf16>, vector<2x96xf32> -> vector<2x96xf32>
    %c0_23 = arith.constant 0 : index
    %c0_24 = arith.constant 0 : index
    %c0_25 = arith.constant 0 : index
    %29 = vector.load %arg7[%c0_23, %c0_24, %c0_25] : memref<3x1x96xf32, #tpu.memory_space<vmem>>, vector<1x1x96xf32>
    %30 = vector.shape_cast %29 : vector<1x1x96xf32> to vector<1x96xf32>
    %31 = vector.broadcast %30 : vector<1x96xf32> to vector<2x96xf32>
    %32 = arith.addf %28, %31 : vector<2x96xf32>
    %33 = vector.extract_strided_slice %24 {offsets = [0, 0], sizes = [2, 64], strides = [1, 1]} : vector<2x96xf32> to vector<2x64xf32>
    %34 = vector.extract_strided_slice %32 {offsets = [0, 0], sizes = [2, 64], strides = [1, 1]} : vector<2x96xf32> to vector<2x64xf32>
    %35 = arith.addf %33, %34 : vector<2x64xf32>
    %36 = arith.negf %35 : vector<2x64xf32>
    %37 = math.exp %36 : vector<2x64xf32>
    %cst_26 = arith.constant 1.000000e+00 : f32
    %38 = vector.broadcast %cst_26 : f32 to vector<2x64xf32>
    %39 = arith.addf %38, %37 : vector<2x64xf32>
    %40 = arith.divf %38, %39 : vector<2x64xf32>
    %41 = vector.extract_strided_slice %40 {offsets = [0, 0], sizes = [2, 32], strides = [1, 1]} : vector<2x64xf32> to vector<2x32xf32>
    %42 = vector.extract_strided_slice %40 {offsets = [0, 32], sizes = [2, 32], strides = [1, 1]} : vector<2x64xf32> to vector<2x32xf32>
    %43 = vector.extract_strided_slice %24 {offsets = [0, 64], sizes = [2, 32], strides = [1, 1]} : vector<2x96xf32> to vector<2x32xf32>
    %44 = vector.extract_strided_slice %32 {offsets = [0, 64], sizes = [2, 32], strides = [1, 1]} : vector<2x96xf32> to vector<2x32xf32>
    %45 = arith.mulf %41, %44 : vector<2x32xf32>
    %46 = arith.addf %43, %45 : vector<2x32xf32>
    %47 = math.tanh %46 : vector<2x32xf32>
    %cst_27 = arith.constant 1.000000e+00 : f32
    %48 = vector.broadcast %cst_27 : f32 to vector<2x32xf32>
    %49 = arith.subf %48, %42 : vector<2x32xf32>
    %50 = arith.mulf %49, %47 : vector<2x32xf32>
    %51 = arith.mulf %42, %7 : vector<2x32xf32>
    %52 = arith.addf %50, %51 : vector<2x32xf32>
    %53 = arith.truncf %52 : vector<2x32xf32> to vector<2x32xbf16>
    %c0_28 = arith.constant 0 : index
    %c0_29 = arith.constant 0 : index
    %c0_30 = arith.constant 0 : index
    %54 = vector.load %arg8[%c0_28, %c0_29, %c0_30] : memref<3x32x8xbf16, #tpu.memory_space<vmem>>, vector<1x32x8xbf16>
    %55 = vector.shape_cast %54 : vector<1x32x8xbf16> to vector<32x8xbf16>
    %cst_31 = arith.constant dense<0.000000e+00> : vector<2x8xf32>
    %56 = tpu.matmul %53, %55, %cst_31 {dimension_numbers = #tpu.dot_dimension_numbers<[1], [0], [0], [1], [0, 0, 1, 1], [], []>} : vector<2x32xbf16>, vector<32x8xbf16>, vector<2x8xf32> -> vector<2x8xf32>
    %c0_32 = arith.constant 0 : index
    %c0_33 = arith.constant 0 : index
    %c0_34 = arith.constant 0 : index
    %57 = vector.load %arg9[%c0_32, %c0_33, %c0_34] : memref<3x1x8xf32, #tpu.memory_space<vmem>>, vector<1x1x8xf32>
    %58 = vector.shape_cast %57 : vector<1x1x8xf32> to vector<1x8xf32>
    %59 = vector.broadcast %58 : vector<1x8xf32> to vector<2x8xf32>
    %60 = arith.addf %56, %59 : vector<2x8xf32>
    %cst_35 = arith.constant dense<0xFF800000> : vector<2xf32>
    %61 = vector.multi_reduction <maximumf>, %60, %cst_35 [1] : vector<2x8xf32> to vector<2xf32>
    %62 = vector.shape_cast %61 : vector<2xf32> to vector<2x1xf32>
    %63 = vector.broadcast %62 : vector<2x1xf32> to vector<2x8xf32>
    %64 = arith.subf %60, %63 : vector<2x8xf32>
    %65 = math.exp %64 : vector<2x8xf32>
    %cst_36 = arith.constant dense<0.000000e+00> : vector<2xf32>
    %66 = vector.multi_reduction <add>, %65, %cst_36 [1] : vector<2x8xf32> to vector<2xf32>
    %67 = vector.shape_cast %66 : vector<2xf32> to vector<2x1xf32>
    %68 = math.log %67 : vector<2x1xf32>
    %69 = tpu.reciprocal %67 {approx = true} : vector<2x1xf32> -> vector<2x1xf32>
    %70 = arith.mulf %65, %64 : vector<2x8xf32>
    %cst_37 = arith.constant dense<0.000000e+00> : vector<2xf32>
    %71 = vector.multi_reduction <add>, %70, %cst_37 [1] : vector<2x8xf32> to vector<2xf32>
    %72 = vector.shape_cast %71 : vector<2xf32> to vector<2x1xf32>
    %73 = arith.mulf %72, %69 : vector<2x1xf32>
    %74 = arith.subf %68, %73 : vector<2x1xf32>
    %cst_38 = arith.constant 0.000000e+00 : f32
    %75 = vector.broadcast %cst_38 : f32 to vector<2x1xf32>
    %76 = arith.subf %75, %68 : vector<2x1xf32>
    %77 = vector.broadcast %62 : vector<2x1xf32> to vector<2x8xf32>
    %78 = arith.cmpf oge, %60, %77 : vector<2x8xf32>
    %c8_i32 = arith.constant 8 : i32
    %79 = vector.broadcast %c8_i32 : i32 to vector<2x8xi32>
    %80 = arith.select %78, %2, %79 : vector<2x8xi1>, vector<2x8xi32>
    %cst_39 = arith.constant dense<2147483647> : vector<2xi32>
    %81 = vector.multi_reduction <minsi>, %80, %cst_39 [1] : vector<2x8xi32> to vector<2xi32>
    %82 = vector.shape_cast %81 : vector<2xi32> to vector<2x1xi32>
    %c0_i32 = arith.constant 0 : i32
    %83 = vector.broadcast %c0_i32 : i32 to vector<2x128xi32>
    %84 = arith.cmpi eq, %3, %83 : vector<2x128xi32>
    %85 = arith.sitofp %82 : vector<2x1xi32> to vector<2x1xf32>
    %c1_i32 = arith.constant 1 : i32
    %86 = vector.broadcast %c1_i32 : i32 to vector<2x128xi32>
    %87 = arith.cmpi eq, %3, %86 : vector<2x128xi32>
    %c2_i32 = arith.constant 2 : i32
    %88 = vector.broadcast %c2_i32 : i32 to vector<2x128xi32>
    %89 = arith.cmpi eq, %3, %88 : vector<2x128xi32>
    %cst_40 = arith.constant 0.000000e+00 : f32
    %90 = vector.shape_cast %74 : vector<2x1xf32> to vector<2x1xf32>
    %91 = vector.broadcast %90 : vector<2x1xf32> to vector<2x128xf32>
    %92 = vector.broadcast %cst_40 : f32 to vector<2x128xf32>
    %93 = arith.select %89, %91, %92 : vector<2x128xi1>, vector<2x128xf32>
    %94 = vector.shape_cast %76 : vector<2x1xf32> to vector<2x1xf32>
    %95 = vector.broadcast %94 : vector<2x1xf32> to vector<2x128xf32>
    %96 = arith.select %87, %95, %93 : vector<2x128xi1>, vector<2x128xf32>
    %97 = vector.shape_cast %85 : vector<2x1xf32> to vector<2x1xf32>
    %98 = vector.broadcast %97 : vector<2x1xf32> to vector<2x128xf32>
    %99 = arith.select %84, %98, %96 : vector<2x128xi1>, vector<2x128xf32>
    %c0_41 = arith.constant 0 : index
    %c0_42 = arith.constant 0 : index
    %c0_43 = arith.constant 0 : index
    %100 = vector.load %arg10[%c0_41, %c0_42, %c0_43] : memref<2x3x32xf32, #tpu.memory_space<vmem>>, vector<2x1x32xf32>
    %101 = vector.shape_cast %100 : vector<2x1x32xf32> to vector<2x32xf32>
    %102 = vector.shape_cast %52 : vector<2x32xf32> to vector<2x1x32xf32>
    tpu.vector_store %arg10[%c0_41, %c0_42, %c0_43], %102 {strides = array<i32>} : memref<2x3x32xf32, #tpu.memory_space<vmem>>, vector<2x1x32xf32>,
    %c0_44 = arith.constant 0 : index
    %c0_45 = arith.constant 0 : index
    %c0_46 = arith.constant 0 : index
    %103 = vector.load %arg11[%c0_44, %c0_45, %c0_46] : memref<2x3x128xf32, #tpu.memory_space<vmem>>, vector<2x1x128xf32>
    %104 = vector.shape_cast %103 : vector<2x1x128xf32> to vector<2x128xf32>
    %105 = vector.shape_cast %99 : vector<2x128xf32> to vector<2x1x128xf32>
    tpu.vector_store %arg11[%c0_44, %c0_45, %c0_46], %105 {strides = array<i32>} : memref<2x3x128xf32, #tpu.memory_space<vmem>>, vector<2x1x128xf32>,
    %106 = vector.extract_strided_slice %0 {offsets = [0, 1, 0], sizes = [2, 1, 16], strides = [1, 1, 1]} : vector<2x3x16xbf16> to vector<2x1x16xbf16>
    %107 = vector.shape_cast %106 : vector<2x1x16xbf16> to vector<2x16xbf16>
    %108 = vector.extract_strided_slice %1 {offsets = [0, 1, 0], sizes = [2, 1, 32], strides = [1, 1, 1]} : vector<2x3x32xf32> to vector<2x1x32xf32>
    %109 = vector.shape_cast %108 : vector<2x1x32xf32> to vector<2x32xf32>
    %c1 = arith.constant 1 : index
    %c0_47 = arith.constant 0 : index
    %c0_48 = arith.constant 0 : index
    %110 = vector.load %arg2[%c1, %c0_47, %c0_48] : memref<3x16x32xbf16, #tpu.memory_space<vmem>>, vector<1x16x32xbf16>
    %111 = vector.shape_cast %110 : vector<1x16x32xbf16> to vector<16x32xbf16>
    %cst_49 = arith.constant dense<0.000000e+00> : vector<2x32xf32>
    %112 = tpu.matmul %107, %111, %cst_49 {dimension_numbers = #tpu.dot_dimension_numbers<[1], [0], [0], [1], [0, 0, 1, 1], [], []>} : vector<2x16xbf16>, vector<16x32xbf16>, vector<2x32xf32> -> vector<2x32xf32>
    %c1_50 = arith.constant 1 : index
    %c0_51 = arith.constant 0 : index
    %c0_52 = arith.constant 0 : index
    %113 = vector.load %arg3[%c1_50, %c0_51, %c0_52] : memref<3x1x32xf32, #tpu.memory_space<vmem>>, vector<1x1x32xf32>
    %114 = vector.shape_cast %113 : vector<1x1x32xf32> to vector<1x32xf32>
    %115 = vector.broadcast %114 : vector<1x32xf32> to vector<2x32xf32>
    %116 = arith.addf %112, %115 : vector<2x32xf32>
    %cst_53 = arith.constant 0.000000e+00 : f32
    %117 = vector.broadcast %cst_53 : f32 to vector<2x32xf32>
    %118 = arith.maximumf %116, %117 : vector<2x32xf32>
    %119 = arith.truncf %118 : vector<2x32xf32> to vector<2x32xbf16>
    %c1_54 = arith.constant 1 : index
    %c0_55 = arith.constant 0 : index
    %c0_56 = arith.constant 0 : index
    %120 = vector.load %arg4[%c1_54, %c0_55, %c0_56] : memref<3x32x96xbf16, #tpu.memory_space<vmem>>, vector<1x32x96xbf16>
    %121 = vector.shape_cast %120 : vector<1x32x96xbf16> to vector<32x96xbf16>
    %cst_57 = arith.constant dense<0.000000e+00> : vector<2x96xf32>
    %122 = tpu.matmul %119, %121, %cst_57 {dimension_numbers = #tpu.dot_dimension_numbers<[1], [0], [0], [1], [0, 0, 1, 1], [], []>} : vector<2x32xbf16>, vector<32x96xbf16>, vector<2x96xf32> -> vector<2x96xf32>
    %c1_58 = arith.constant 1 : index
    %c0_59 = arith.constant 0 : index
    %c0_60 = arith.constant 0 : index
    %123 = vector.load %arg6[%c1_58, %c0_59, %c0_60] : memref<3x1x96xf32, #tpu.memory_space<vmem>>, vector<1x1x96xf32>
    %124 = vector.shape_cast %123 : vector<1x1x96xf32> to vector<1x96xf32>
    %125 = vector.broadcast %124 : vector<1x96xf32> to vector<2x96xf32>
    %126 = arith.addf %122, %125 : vector<2x96xf32>
    %127 = arith.truncf %109 : vector<2x32xf32> to vector<2x32xbf16>
    %c1_61 = arith.constant 1 : index
    %c0_62 = arith.constant 0 : index
    %c0_63 = arith.constant 0 : index
    %128 = vector.load %arg5[%c1_61, %c0_62, %c0_63] : memref<3x32x96xbf16, #tpu.memory_space<vmem>>, vector<1x32x96xbf16>
    %129 = vector.shape_cast %128 : vector<1x32x96xbf16> to vector<32x96xbf16>
    %cst_64 = arith.constant dense<0.000000e+00> : vector<2x96xf32>
    %130 = tpu.matmul %127, %129, %cst_64 {dimension_numbers = #tpu.dot_dimension_numbers<[1], [0], [0], [1], [0, 0, 1, 1], [], []>} : vector<2x32xbf16>, vector<32x96xbf16>, vector<2x96xf32> -> vector<2x96xf32>
    %c1_65 = arith.constant 1 : index
    %c0_66 = arith.constant 0 : index
    %c0_67 = arith.constant 0 : index
    %131 = vector.load %arg7[%c1_65, %c0_66, %c0_67] : memref<3x1x96xf32, #tpu.memory_space<vmem>>, vector<1x1x96xf32>
    %132 = vector.shape_cast %131 : vector<1x1x96xf32> to vector<1x96xf32>
    %133 = vector.broadcast %132 : vector<1x96xf32> to vector<2x96xf32>
    %134 = arith.addf %130, %133 : vector<2x96xf32>
    %135 = vector.extract_strided_slice %126 {offsets = [0, 0], sizes = [2, 64], strides = [1, 1]} : vector<2x96xf32> to vector<2x64xf32>
    %136 = vector.extract_strided_slice %134 {offsets = [0, 0], sizes = [2, 64], strides = [1, 1]} : vector<2x96xf32> to vector<2x64xf32>
    %137 = arith.addf %135, %136 : vector<2x64xf32>
    %138 = arith.negf %137 : vector<2x64xf32>
    %139 = math.exp %138 : vector<2x64xf32>
    %cst_68 = arith.constant 1.000000e+00 : f32
    %140 = vector.broadcast %cst_68 : f32 to vector<2x64xf32>
    %141 = arith.addf %140, %139 : vector<2x64xf32>
    %142 = arith.divf %140, %141 : vector<2x64xf32>
    %143 = vector.extract_strided_slice %142 {offsets = [0, 0], sizes = [2, 32], strides = [1, 1]} : vector<2x64xf32> to vector<2x32xf32>
    %144 = vector.extract_strided_slice %142 {offsets = [0, 32], sizes = [2, 32], strides = [1, 1]} : vector<2x64xf32> to vector<2x32xf32>
    %145 = vector.extract_strided_slice %126 {offsets = [0, 64], sizes = [2, 32], strides = [1, 1]} : vector<2x96xf32> to vector<2x32xf32>
    %146 = vector.extract_strided_slice %134 {offsets = [0, 64], sizes = [2, 32], strides = [1, 1]} : vector<2x96xf32> to vector<2x32xf32>
    %147 = arith.mulf %143, %146 : vector<2x32xf32>
    %148 = arith.addf %145, %147 : vector<2x32xf32>
    %149 = math.tanh %148 : vector<2x32xf32>
    %cst_69 = arith.constant 1.000000e+00 : f32
    %150 = vector.broadcast %cst_69 : f32 to vector<2x32xf32>
    %151 = arith.subf %150, %144 : vector<2x32xf32>
    %152 = arith.mulf %151, %149 : vector<2x32xf32>
    %153 = arith.mulf %144, %109 : vector<2x32xf32>
    %154 = arith.addf %152, %153 : vector<2x32xf32>
    %155 = arith.truncf %154 : vector<2x32xf32> to vector<2x32xbf16>
    %c1_70 = arith.constant 1 : index
    %c0_71 = arith.constant 0 : index
    %c0_72 = arith.constant 0 : index
    %156 = vector.load %arg8[%c1_70, %c0_71, %c0_72] : memref<3x32x8xbf16, #tpu.memory_space<vmem>>, vector<1x32x8xbf16>
    %157 = vector.shape_cast %156 : vector<1x32x8xbf16> to vector<32x8xbf16>
    %cst_73 = arith.constant dense<0.000000e+00> : vector<2x8xf32>
    %158 = tpu.matmul %155, %157, %cst_73 {dimension_numbers = #tpu.dot_dimension_numbers<[1], [0], [0], [1], [0, 0, 1, 1], [], []>} : vector<2x32xbf16>, vector<32x8xbf16>, vector<2x8xf32> -> vector<2x8xf32>
    %c1_74 = arith.constant 1 : index
    %c0_75 = arith.constant 0 : index
    %c0_76 = arith.constant 0 : index
    %159 = vector.load %arg9[%c1_74, %c0_75, %c0_76] : memref<3x1x8xf32, #tpu.memory_space<vmem>>, vector<1x1x8xf32>
    %160 = vector.shape_cast %159 : vector<1x1x8xf32> to vector<1x8xf32>
    %161 = vector.broadcast %160 : vector<1x8xf32> to vector<2x8xf32>
    %162 = arith.addf %158, %161 : vector<2x8xf32>
    %cst_77 = arith.constant dense<0xFF800000> : vector<2xf32>
    %163 = vector.multi_reduction <maximumf>, %162, %cst_77 [1] : vector<2x8xf32> to vector<2xf32>
    %164 = vector.shape_cast %163 : vector<2xf32> to vector<2x1xf32>
    %165 = vector.broadcast %164 : vector<2x1xf32> to vector<2x8xf32>
    %166 = arith.subf %162, %165 : vector<2x8xf32>
    %167 = math.exp %166 : vector<2x8xf32>
    %cst_78 = arith.constant dense<0.000000e+00> : vector<2xf32>
    %168 = vector.multi_reduction <add>, %167, %cst_78 [1] : vector<2x8xf32> to vector<2xf32>
    %169 = vector.shape_cast %168 : vector<2xf32> to vector<2x1xf32>
    %170 = math.log %169 : vector<2x1xf32>
    %171 = tpu.reciprocal %169 {approx = true} : vector<2x1xf32> -> vector<2x1xf32>
    %172 = arith.mulf %167, %166 : vector<2x8xf32>
    %cst_79 = arith.constant dense<0.000000e+00> : vector<2xf32>
    %173 = vector.multi_reduction <add>, %172, %cst_79 [1] : vector<2x8xf32> to vector<2xf32>
    %174 = vector.shape_cast %173 : vector<2xf32> to vector<2x1xf32>
    %175 = arith.mulf %174, %171 : vector<2x1xf32>
    %176 = arith.subf %170, %175 : vector<2x1xf32>
    %cst_80 = arith.constant 0.000000e+00 : f32
    %177 = vector.broadcast %cst_80 : f32 to vector<2x1xf32>
    %178 = arith.subf %177, %170 : vector<2x1xf32>
    %179 = vector.broadcast %164 : vector<2x1xf32> to vector<2x8xf32>
    %180 = arith.cmpf oge, %162, %179 : vector<2x8xf32>
    %c8_i32_81 = arith.constant 8 : i32
    %181 = vector.broadcast %c8_i32_81 : i32 to vector<2x8xi32>
    %182 = arith.select %180, %2, %181 : vector<2x8xi1>, vector<2x8xi32>
    %cst_82 = arith.constant dense<2147483647> : vector<2xi32>
    %183 = vector.multi_reduction <minsi>, %182, %cst_82 [1] : vector<2x8xi32> to vector<2xi32>
    %184 = vector.shape_cast %183 : vector<2xi32> to vector<2x1xi32>
    %c0_i32_83 = arith.constant 0 : i32
    %185 = vector.broadcast %c0_i32_83 : i32 to vector<2x128xi32>
    %186 = arith.cmpi eq, %3, %185 : vector<2x128xi32>
    %187 = arith.sitofp %184 : vector<2x1xi32> to vector<2x1xf32>
    %c1_i32_84 = arith.constant 1 : i32
    %188 = vector.broadcast %c1_i32_84 : i32 to vector<2x128xi32>
    %189 = arith.cmpi eq, %3, %188 : vector<2x128xi32>
    %c2_i32_85 = arith.constant 2 : i32
    %190 = vector.broadcast %c2_i32_85 : i32 to vector<2x128xi32>
    %191 = arith.cmpi eq, %3, %190 : vector<2x128xi32>
    %cst_86 = arith.constant 0.000000e+00 : f32
    %192 = vector.shape_cast %176 : vector<2x1xf32> to vector<2x1xf32>
    %193 = vector.broadcast %192 : vector<2x1xf32> to vector<2x128xf32>
    %194 = vector.broadcast %cst_86 : f32 to vector<2x128xf32>
    %195 = arith.select %191, %193, %194 : vector<2x128xi1>, vector<2x128xf32>
    %196 = vector.shape_cast %178 : vector<2x1xf32> to vector<2x1xf32>
    %197 = vector.broadcast %196 : vector<2x1xf32> to vector<2x128xf32>
    %198 = arith.select %189, %197, %195 : vector<2x128xi1>, vector<2x128xf32>
    %199 = vector.shape_cast %187 : vector<2x1xf32> to vector<2x1xf32>
    %200 = vector.broadcast %199 : vector<2x1xf32> to vector<2x128xf32>
    %201 = arith.select %186, %200, %198 : vector<2x128xi1>, vector<2x128xf32>
    %c0_87 = arith.constant 0 : index
    %c1_88 = arith.constant 1 : index
    %c0_89 = arith.constant 0 : index
    %202 = vector.load %arg10[%c0_87, %c1_88, %c0_89] : memref<2x3x32xf32, #tpu.memory_space<vmem>>, vector<2x1x32xf32>
    %203 = vector.shape_cast %202 : vector<2x1x32xf32> to vector<2x32xf32>
    %204 = vector.shape_cast %154 : vector<2x32xf32> to vector<2x1x32xf32>
    tpu.vector_store %arg10[%c0_87, %c1_88, %c0_89], %204 {strides = array<i32>} : memref<2x3x32xf32, #tpu.memory_space<vmem>>, vector<2x1x32xf32>,
    %c0_90 = arith.constant 0 : index
    %c1_91 = arith.constant 1 : index
    %c0_92 = arith.constant 0 : index
    %205 = vector.load %arg11[%c0_90, %c1_91, %c0_92] : memref<2x3x128xf32, #tpu.memory_space<vmem>>, vector<2x1x128xf32>
    %206 = vector.shape_cast %205 : vector<2x1x128xf32> to vector<2x128xf32>
    %207 = vector.shape_cast %201 : vector<2x128xf32> to vector<2x1x128xf32>
    tpu.vector_store %arg11[%c0_90, %c1_91, %c0_92], %207 {strides = array<i32>} : memref<2x3x128xf32, #tpu.memory_space<vmem>>, vector<2x1x128xf32>,
    %208 = vector.extract_strided_slice %0 {offsets = [0, 2, 0], sizes = [2, 1, 16], strides = [1, 1, 1]} : vector<2x3x16xbf16> to vector<2x1x16xbf16>
    %209 = vector.shape_cast %208 : vector<2x1x16xbf16> to vector<2x16xbf16>
    %210 = vector.extract_strided_slice %1 {offsets = [0, 2, 0], sizes = [2, 1, 32], strides = [1, 1, 1]} : vector<2x3x32xf32> to vector<2x1x32xf32>
    %211 = vector.shape_cast %210 : vector<2x1x32xf32> to vector<2x32xf32>
    %c2 = arith.constant 2 : index
    %c0_93 = arith.constant 0 : index
    %c0_94 = arith.constant 0 : index
    %212 = vector.load %arg2[%c2, %c0_93, %c0_94] : memref<3x16x32xbf16, #tpu.memory_space<vmem>>, vector<1x16x32xbf16>
    %213 = vector.shape_cast %212 : vector<1x16x32xbf16> to vector<16x32xbf16>
    %cst_95 = arith.constant dense<0.000000e+00> : vector<2x32xf32>
    %214 = tpu.matmul %209, %213, %cst_95 {dimension_numbers = #tpu.dot_dimension_numbers<[1], [0], [0], [1], [0, 0, 1, 1], [], []>} : vector<2x16xbf16>, vector<16x32xbf16>, vector<2x32xf32> -> vector<2x32xf32>
    %c2_96 = arith.constant 2 : index
    %c0_97 = arith.constant 0 : index
    %c0_98 = arith.constant 0 : index
    %215 = vector.load %arg3[%c2_96, %c0_97, %c0_98] : memref<3x1x32xf32, #tpu.memory_space<vmem>>, vector<1x1x32xf32>
    %216 = vector.shape_cast %215 : vector<1x1x32xf32> to vector<1x32xf32>
    %217 = vector.broadcast %216 : vector<1x32xf32> to vector<2x32xf32>
    %218 = arith.addf %214, %217 : vector<2x32xf32>
    %cst_99 = arith.constant 0.000000e+00 : f32
    %219 = vector.broadcast %cst_99 : f32 to vector<2x32xf32>
    %220 = arith.maximumf %218, %219 : vector<2x32xf32>
    %221 = arith.truncf %220 : vector<2x32xf32> to vector<2x32xbf16>
    %c2_100 = arith.constant 2 : index
    %c0_101 = arith.constant 0 : index
    %c0_102 = arith.constant 0 : index
    %222 = vector.load %arg4[%c2_100, %c0_101, %c0_102] : memref<3x32x96xbf16, #tpu.memory_space<vmem>>, vector<1x32x96xbf16>
    %223 = vector.shape_cast %222 : vector<1x32x96xbf16> to vector<32x96xbf16>
    %cst_103 = arith.constant dense<0.000000e+00> : vector<2x96xf32>
    %224 = tpu.matmul %221, %223, %cst_103 {dimension_numbers = #tpu.dot_dimension_numbers<[1], [0], [0], [1], [0, 0, 1, 1], [], []>} : vector<2x32xbf16>, vector<32x96xbf16>, vector<2x96xf32> -> vector<2x96xf32>
    %c2_104 = arith.constant 2 : index
    %c0_105 = arith.constant 0 : index
    %c0_106 = arith.constant 0 : index
    %225 = vector.load %arg6[%c2_104, %c0_105, %c0_106] : memref<3x1x96xf32, #tpu.memory_space<vmem>>, vector<1x1x96xf32>
    %226 = vector.shape_cast %225 : vector<1x1x96xf32> to vector<1x96xf32>
    %227 = vector.broadcast %226 : vector<1x96xf32> to vector<2x96xf32>
    %228 = arith.addf %224, %227 : vector<2x96xf32>
    %229 = arith.truncf %211 : vector<2x32xf32> to vector<2x32xbf16>
    %c2_107 = arith.constant 2 : index
    %c0_108 = arith.constant 0 : index
    %c0_109 = arith.constant 0 : index
    %230 = vector.load %arg5[%c2_107, %c0_108, %c0_109] : memref<3x32x96xbf16, #tpu.memory_space<vmem>>, vector<1x32x96xbf16>
    %231 = vector.shape_cast %230 : vector<1x32x96xbf16> to vector<32x96xbf16>
    %cst_110 = arith.constant dense<0.000000e+00> : vector<2x96xf32>
    %232 = tpu.matmul %229, %231, %cst_110 {dimension_numbers = #tpu.dot_dimension_numbers<[1], [0], [0], [1], [0, 0, 1, 1], [], []>} : vector<2x32xbf16>, vector<32x96xbf16>, vector<2x96xf32> -> vector<2x96xf32>
    %c2_111 = arith.constant 2 : index
    %c0_112 = arith.constant 0 : index
    %c0_113 = arith.constant 0 : index
    %233 = vector.load %arg7[%c2_111, %c0_112, %c0_113] : memref<3x1x96xf32, #tpu.memory_space<vmem>>, vector<1x1x96xf32>
    %234 = vector.shape_cast %233 : vector<1x1x96xf32> to vector<1x96xf32>
    %235 = vector.broadcast %234 : vector<1x96xf32> to vector<2x96xf32>
    %236 = arith.addf %232, %235 : vector<2x96xf32>
    %237 = vector.extract_strided_slice %228 {offsets = [0, 0], sizes = [2, 64], strides = [1, 1]} : vector<2x96xf32> to vector<2x64xf32>
    %238 = vector.extract_strided_slice %236 {offsets = [0, 0], sizes = [2, 64], strides = [1, 1]} : vector<2x96xf32> to vector<2x64xf32>
    %239 = arith.addf %237, %238 : vector<2x64xf32>
    %240 = arith.negf %239 : vector<2x64xf32>
    %241 = math.exp %240 : vector<2x64xf32>
    %cst_114 = arith.constant 1.000000e+00 : f32
    %242 = vector.broadcast %cst_114 : f32 to vector<2x64xf32>
    %243 = arith.addf %242, %241 : vector<2x64xf32>
    %244 = arith.divf %242, %243 : vector<2x64xf32>
    %245 = vector.extract_strided_slice %244 {offsets = [0, 0], sizes = [2, 32], strides = [1, 1]} : vector<2x64xf32> to vector<2x32xf32>
    %246 = vector.extract_strided_slice %244 {offsets = [0, 32], sizes = [2, 32], strides = [1, 1]} : vector<2x64xf32> to vector<2x32xf32>
    %247 = vector.extract_strided_slice %228 {offsets = [0, 64], sizes = [2, 32], strides = [1, 1]} : vector<2x96xf32> to vector<2x32xf32>
    %248 = vector.extract_strided_slice %236 {offsets = [0, 64], sizes = [2, 32], strides = [1, 1]} : vector<2x96xf32> to vector<2x32xf32>
    %249 = arith.mulf %245, %248 : vector<2x32xf32>
    %250 = arith.addf %247, %249 : vector<2x32xf32>
    %251 = math.tanh %250 : vector<2x32xf32>
    %cst_115 = arith.constant 1.000000e+00 : f32
    %252 = vector.broadcast %cst_115 : f32 to vector<2x32xf32>
    %253 = arith.subf %252, %246 : vector<2x32xf32>
    %254 = arith.mulf %253, %251 : vector<2x32xf32>
    %255 = arith.mulf %246, %211 : vector<2x32xf32>
    %256 = arith.addf %254, %255 : vector<2x32xf32>
    %257 = arith.truncf %256 : vector<2x32xf32> to vector<2x32xbf16>
    %c2_116 = arith.constant 2 : index
    %c0_117 = arith.constant 0 : index
    %c0_118 = arith.constant 0 : index
    %258 = vector.load %arg8[%c2_116, %c0_117, %c0_118] : memref<3x32x8xbf16, #tpu.memory_space<vmem>>, vector<1x32x8xbf16>
    %259 = vector.shape_cast %258 : vector<1x32x8xbf16> to vector<32x8xbf16>
    %cst_119 = arith.constant dense<0.000000e+00> : vector<2x8xf32>
    %260 = tpu.matmul %257, %259, %cst_119 {dimension_numbers = #tpu.dot_dimension_numbers<[1], [0], [0], [1], [0, 0, 1, 1], [], []>} : vector<2x32xbf16>, vector<32x8xbf16>, vector<2x8xf32> -> vector<2x8xf32>
    %c2_120 = arith.constant 2 : index
    %c0_121 = arith.constant 0 : index
    %c0_122 = arith.constant 0 : index
    %261 = vector.load %arg9[%c2_120, %c0_121, %c0_122] : memref<3x1x8xf32, #tpu.memory_space<vmem>>, vector<1x1x8xf32>
    %262 = vector.shape_cast %261 : vector<1x1x8xf32> to vector<1x8xf32>
    %263 = vector.broadcast %262 : vector<1x8xf32> to vector<2x8xf32>
    %264 = arith.addf %260, %263 : vector<2x8xf32>
    %cst_123 = arith.constant dense<0xFF800000> : vector<2xf32>
    %265 = vector.multi_reduction <maximumf>, %264, %cst_123 [1] : vector<2x8xf32> to vector<2xf32>
    %266 = vector.shape_cast %265 : vector<2xf32> to vector<2x1xf32>
    %267 = vector.broadcast %266 : vector<2x1xf32> to vector<2x8xf32>
    %268 = arith.subf %264, %267 : vector<2x8xf32>
    %269 = math.exp %268 : vector<2x8xf32>
    %cst_124 = arith.constant dense<0.000000e+00> : vector<2xf32>
    %270 = vector.multi_reduction <add>, %269, %cst_124 [1] : vector<2x8xf32> to vector<2xf32>
    %271 = vector.shape_cast %270 : vector<2xf32> to vector<2x1xf32>
    %272 = math.log %271 : vector<2x1xf32>
    %273 = tpu.reciprocal %271 {approx = true} : vector<2x1xf32> -> vector<2x1xf32>
    %274 = arith.mulf %269, %268 : vector<2x8xf32>
    %cst_125 = arith.constant dense<0.000000e+00> : vector<2xf32>
    %275 = vector.multi_reduction <add>, %274, %cst_125 [1] : vector<2x8xf32> to vector<2xf32>
    %276 = vector.shape_cast %275 : vector<2xf32> to vector<2x1xf32>
    %277 = arith.mulf %276, %273 : vector<2x1xf32>
    %278 = arith.subf %272, %277 : vector<2x1xf32>
    %cst_126 = arith.constant 0.000000e+00 : f32
    %279 = vector.broadcast %cst_126 : f32 to vector<2x1xf32>
    %280 = arith.subf %279, %272 : vector<2x1xf32>
    %281 = vector.broadcast %266 : vector<2x1xf32> to vector<2x8xf32>
    %282 = arith.cmpf oge, %264, %281 : vector<2x8xf32>
    %c8_i32_127 = arith.constant 8 : i32
    %283 = vector.broadcast %c8_i32_127 : i32 to vector<2x8xi32>
    %284 = arith.select %282, %2, %283 : vector<2x8xi1>, vector<2x8xi32>
    %cst_128 = arith.constant dense<2147483647> : vector<2xi32>
    %285 = vector.multi_reduction <minsi>, %284, %cst_128 [1] : vector<2x8xi32> to vector<2xi32>
    %286 = vector.shape_cast %285 : vector<2xi32> to vector<2x1xi32>
    %c0_i32_129 = arith.constant 0 : i32
    %287 = vector.broadcast %c0_i32_129 : i32 to vector<2x128xi32>
    %288 = arith.cmpi eq, %3, %287 : vector<2x128xi32>
    %289 = arith.sitofp %286 : vector<2x1xi32> to vector<2x1xf32>
    %c1_i32_130 = arith.constant 1 : i32
    %290 = vector.broadcast %c1_i32_130 : i32 to vector<2x128xi32>
    %291 = arith.cmpi eq, %3, %290 : vector<2x128xi32>
    %c2_i32_131 = arith.constant 2 : i32
    %292 = vector.broadcast %c2_i32_131 : i32 to vector<2x128xi32>
    %293 = arith.cmpi eq, %3, %292 : vector<2x128xi32>
    %cst_132 = arith.constant 0.000000e+00 : f32
    %294 = vector.shape_cast %278 : vector<2x1xf32> to vector<2x1xf32>
    %295 = vector.broadcast %294 : vector<2x1xf32> to vector<2x128xf32>
    %296 = vector.broadcast %cst_132 : f32 to vector<2x128xf32>
    %297 = arith.select %293, %295, %296 : vector<2x128xi1>, vector<2x128xf32>
    %298 = vector.shape_cast %280 : vector<2x1xf32> to vector<2x1xf32>
    %299 = vector.broadcast %298 : vector<2x1xf32> to vector<2x128xf32>
    %300 = arith.select %291, %299, %297 : vector<2x128xi1>, vector<2x128xf32>
    %301 = vector.shape_cast %289 : vector<2x1xf32> to vector<2x1xf32>
    %302 = vector.broadcast %301 : vector<2x1xf32> to vector<2x128xf32>
    %303 = arith.select %288, %302, %300 : vector<2x128xi1>, vector<2x128xf32>
    %c0_133 = arith.constant 0 : index
    %c2_134 = arith.constant 2 : index
    %c0_135 = arith.constant 0 : index
    %304 = vector.load %arg10[%c0_133, %c2_134, %c0_135] : memref<2x3x32xf32, #tpu.memory_space<vmem>>, vector<2x1x32xf32>
    %305 = vector.shape_cast %304 : vector<2x1x32xf32> to vector<2x32xf32>
    %306 = vector.shape_cast %256 : vector<2x32xf32> to vector<2x1x32xf32>
    tpu.vector_store %arg10[%c0_133, %c2_134, %c0_135], %306 {strides = array<i32>} : memref<2x3x32xf32, #tpu.memory_space<vmem>>, vector<2x1x32xf32>,
    %c0_136 = arith.constant 0 : index
    %c2_137 = arith.constant 2 : index
    %c0_138 = arith.constant 0 : index
    %307 = vector.load %arg11[%c0_136, %c2_137, %c0_138] : memref<2x3x128xf32, #tpu.memory_space<vmem>>, vector<2x1x128xf32>
    %308 = vector.shape_cast %307 : vector<2x1x128xf32> to vector<2x128xf32>
    %309 = vector.shape_cast %303 : vector<2x128xf32> to vector<2x1x128xf32>
    tpu.vector_store %arg11[%c0_136, %c2_137, %c0_138], %309 {strides = array<i32>} : memref<2x3x128xf32, #tpu.memory_space<vmem>>, vector<2x1x128xf32>,
    return
  }
}

</mosaic_0001>

<bundles_post_ra>
// kernel: squeeze.5
= control target key start
LH: loop header
LB: loop body
LE: loop exit
PB: predicated region body
PF: predicated region fallthrough
CT: control target
= control target key end

     0   :  { %s85_s0 = inlined_call_operand.vmem [shape: f32[2,3], index: 0, kind: input, shape index: {}]   ;;  %s86_s1 = inlined_call_operand.hbm [shape: f32[6,1], index: 1, kind: output, shape index: {}]  }
   0x1   :  { %v5_v0 = vld [vmem:[%s85_s0] sm:$0x3] }
   0x2   :  { %6 = vst [vmem:[#allocation3] sm:$0x3] %v5_v0 }
   0x3   :  { %2 = vsyncpa [#allocation1], 0  ;;  %vm8_vm0 = vcmask 23552   ;;  %s58_s0 = smov 3   ;;  %vm14_vm1 = vcmask 48152   ;;  %s59_s8 = smov [#allocation0]  }
   0x4   :  { %s26_s9 = sshll.u32 %s59_s8, 4  ;;  %s27_s9 = int_to_ptr.vmem [resolvable:$true] %s26_s9 }
   0x5   :  { %s34_s10 = scalar_lea.vmem %s27_s9, 16  ;;  %s38_s11 = scalar_lea.vmem %s27_s9, 32 }
   0x6   :  { %p35_p0 = scmp.ne.s32.totalorder %s27_s9, %s34_s10  ;;  %p39_p1 = scmp.lt.s32.totalorder %s27_s9, %s27_s9 }
   0x7   :  { %p40_p2 = scmp.lt.s32.totalorder %s38_s11, %s34_s10 }
   0x9   :  { %v11_v1 = vld [vmem:[#allocation3 + $0x1] sm:$0x1]   ;;  %v7_v2 = vld [vmem:[#allocation3] sm:$0x1]   ;;  %p41_p3 = por %p40_p2, %p39_p1 }
   0xa   :  { %12 = vrot.lane.b32.xlu0 %v11_v1, %s58_s0  ;;  %9 = vst.msk [vmem:[#allocation2] sm:$0x1] %vm8_vm0, %v7_v2  }
   0xb   :  { %p42_p4 = pnand %p41_p3, %p35_p0 }
  0x7c   :  { %v13_v3 = vpop.permute.xlu0 %12  }
  0x7d   :  { %15 = vst.msk [vmem:[#allocation2] sm:$0x1] %vm14_vm1, %v13_v3  }
  0x84   :  { %v19_v4 = vld [vmem:[#allocation2] sm:$0x1] }
  0x85   :  { %21 = vst [vmem:[#allocation0] sm:$0x1] %v19_v4 }
  0x86   :  { %45 = shalt.err (!%p42_p4)
}
  0x87   :  { %s46_s14 = scalar_lea.hbm %s86_s1, 16 }
  0x88   :  { %p47_p5 = scmp.ne.s32.totalorder %s86_s1, %s46_s14  ;;  %p50_p6 = scmp.lt.u32.totalorder %s46_s14, %s86_s1 }
  0x8a   :  { %p52_p7 = pnand %p50_p6, %p47_p5 }
  0x8c   :  { %55 = shalt.err (!%p52_p7)
}
  0x8d   :  { %29 = dma.vmem_to_hbm [thread:$0]  %s27_s9, 16, %s86_s1, [#allocation1]  }
  0x8e   :  { %56 = dma.done.wait [#allocation1], 16  }
  0x8f   :  { %57 = vsyncadd [#allocation1], 4294967280 }
  0x90   :  { %31 = vsyncpa [#allocation1], 1 }

// kernel: rnn_ns_agent_forward.1
= control target key start
LH: loop header
LB: loop body
LE: loop exit
PB: predicated region body
PF: predicated region fallthrough
CT: control target
= control target key end

     0   :  { %17 = vsyncpa [#allocation3], 0  ;;  %s2217_s0 = inlined_call_operand.vmem [shape: bf16[2,3,16], index: 0, kind: input, shape index: {}]   ;;  %s2218_s1 = inlined_call_operand.vmem [shape: f32[2,3,32], index: 1, kind: input, shape index: {}, may-alias: {1,10}]   ;;  %s2219_s2 = inlined_call_operand.hbm [shape: bf16[3,16,32], index: 2, kind: input, shape index: {}]   ;;  %s2220_s3 = inlined_call_operand.hbm [shape: f32[3,1,32], index: 3, kind: input, shape index: {}]   ;;  %s2221_s4 = inlined_call_operand.vmem [shape: bf16[3,32,96], index: 4, kind: input, shape index: {}]   ;;  %s2222_s5 = inlined_call_operand.vmem [shape: bf16[3,32,96], index: 5, kind: input, shape index: {}]   ;;  %s2223_s6 = inlined_call_operand.vmem [shape: f32[3,1,96], index: 6, kind: input, shape index: {}]   ;;  %s2224_s7 = inlined_call_operand.hbm [shape: f32[3,1,96], index: 7, kind: input, shape index: {}]   ;;  %s2225_s8 = inlined_call_operand.vmem [shape: bf16[3,32,8], index: 8, kind: input, shape index: {}]   ;;  %s2226_s9 = inlined_call_operand.hbm [shape: f32[3,1,8], index: 9, kind: input, shape index: {}]   ;;  %s2227_s10 = inlined_call_operand.vmem [shape: f32[2,3,32], index: 10, kind: output, shape index: {0}, may-alias: {1,10}]   ;;  %s2228_s11 = inlined_call_operand.vmem [shape: f32[2,3,128], index: 11, kind: output, shape index: {1}]  }
   0x1   :  { %18 = vsyncpa [#allocation5], 0 }
   0x2   :  { %19 = vsyncpa [#allocation8], 0  ;;  %s1747_s17 = smov [#allocation4]   ;;  %s1653_s21 = scalar_lea.hbm %s2220_s3, 48 }
   0x3   :  { %s41_s18 = sshll.u32 %s1747_s17, 4  ;;  %p1654_p0 = scmp.ne.s32.totalorder %s2220_s3, %s1653_s21  ;;  %s42_s18 = int_to_ptr.vmem [resolvable:$true] %s41_s18 }
   0x4   :  { %p1657_p1 = scmp.lt.u32.totalorder %s1653_s21, %s2220_s3 }
   0x6   :  { %p1659_p2 = pnand %p1657_p1, %p1654_p0 }
   0x8   :  { %1662 = shalt.err (!%p1659_p2)
}
   0x9   :  { %s1663_s26 = scalar_lea.vmem %s42_s18, 48  ;;  %s1667_s27 = scalar_lea.vmem %s42_s18, 64 }
   0xa   :  { %p1664_p3 = scmp.ne.s32.totalorder %s42_s18, %s1663_s26  ;;  %p1668_p4 = scmp.lt.s32.totalorder %s42_s18, %s42_s18 }
   0xb   :  { %p1669_p5 = scmp.lt.s32.totalorder %s1667_s27, %s1663_s26 }
   0xd   :  { %p1670_p6 = por %p1669_p5, %p1668_p4 }
   0xf   :  { %p1671_p7 = pnand %p1670_p6, %p1664_p3 }
  0x11   :  { %1674 = shalt.err (!%p1671_p7)
}
  0x12   :  { %s1748_s28 = smov 16   ;;  %s1749_s29 = smov 1  }
  0x13   :  { %47 = dma.hbm_to_vmem [thread:$0]  %s2220_s3, 48, %s42_s18, [#allocation5], %s1748_s28, %s1748_s28, %s1749_s29  }
  0x14   :  { %s1750_s13 = smov [#allocation2]   ;;  %s1675_s17 = scalar_lea.hbm %s2219_s2, 384 }
  0x15   :  { %s29_s14 = sshll.u32 %s1750_s13, 4  ;;  %p1676_p8 = scmp.ne.s32.totalorder %s2219_s2, %s1675_s17  ;;  %s30_s14 = int_to_ptr.vmem [resolvable:$true] %s29_s14 }
  0x16   :  { %p1679_p9 = scmp.lt.u32.totalorder %s1675_s17, %s2219_s2 }
  0x18   :  { %p1681_p10 = pnand %p1679_p9, %p1676_p8 }
  0x1a   :  { %1684 = shalt.err (!%p1681_p10)
}
  0x1b   :  { %s1685_s23 = scalar_lea.vmem %s30_s14, 384  ;;  %p1690_p12 = scmp.lt.s32.totalorder %s30_s14, %s30_s14 }
  0x1c   :  { %p1686_p11 = scmp.ne.s32.totalorder %s30_s14, %s1685_s23  ;;  %p1691_p13 = scmp.lt.s32.totalorder %s1685_s23, %s1685_s23 }
  0x1e   :  { %p1692_p0 = por %p1691_p13, %p1690_p12 }
  0x20   :  { %p1693_p1 = pnand %p1692_p0, %p1686_p11 }
  0x22   :  { %1696 = shalt.err (!%p1693_p1)
}
  0x23   :  { %s1751_s3 = smov 64   ;;  %s1752_s18 = smov 4  }
  0x24   :  { %35 = dma.hbm_to_vmem [thread:$0]  %s2219_s2, 384, %s30_s14, [#allocation3], %s1751_s3, %s1751_s3, %s1752_s18  }
  0x25   :  { %s1753_s26 = smov [#allocation6]   ;;  %s1754_s30 = smov [#allocation7]  }
  0x26   :  { %s59_s27 = sshll.u32 %s1753_s26, 4  ;;  %s73_s12 = sshll.u32 %s1754_s30, 4  ;;  %s60_s27 = int_to_ptr.vmem [resolvable:$true] %s59_s27  ;;  %s1849_s12 = int_to_ptr.vmem [resolvable:$true] %s73_s12 }
  0x27   :  { %s1697_s16 = scalar_lea.hbm %s2224_s7, 48 }
  0x28   :  { %p1698_p2 = scmp.ne.s32.totalorder %s2224_s7, %s1697_s16  ;;  %p1701_p3 = scmp.lt.u32.totalorder %s1697_s16, %s2224_s7 }
  0x2a   :  { %p1703_p4 = pnand %p1701_p3, %p1698_p2 }
  0x2c   :  { %1706 = shalt.err (!%p1703_p4)
}
  0x2d   :  { %s1707_s2 = scalar_lea.vmem %s60_s27, 48  ;;  %s1711_s14 = scalar_lea.vmem %s60_s27, 64 }
  0x2e   :  { %p1708_p5 = scmp.ne.s32.totalorder %s60_s27, %s1707_s2  ;;  %p1712_p6 = scmp.lt.s32.totalorder %s60_s27, %s60_s27 }
  0x2f   :  { %p1713_p7 = scmp.lt.s32.totalorder %s1711_s14, %s1707_s2 }
  0x31   :  { %p1714_p8 = por %p1713_p7, %p1712_p6 }
  0x33   :  { %p1715_p9 = pnand %p1714_p8, %p1708_p5 }
  0x35   :  { %1718 = shalt.err (!%p1715_p9)
}
  0x36   :  { %65 = dma.hbm_to_vmem [thread:$0]  %s2224_s7, 48, %s60_s27, [#allocation5], %s1748_s28, %s1748_s28, %s1749_s29  }
  0x37   :  { %s1719_s25 = scalar_lea.hbm %s2226_s9, 48 }
  0x38   :  { %p1720_p10 = scmp.ne.s32.totalorder %s2226_s9, %s1719_s25  ;;  %p1723_p11 = scmp.lt.u32.totalorder %s1719_s25, %s2226_s9 }
  0x3a   :  { %p1725_p12 = pnand %p1723_p11, %p1720_p10 }
  0x3c   :  { %1728 = shalt.err (!%p1725_p12)
}
  0x3d   :  { %s1729_s16 = scalar_lea.vmem %s1849_s12, 48  ;;  %s1733_s7 = scalar_lea.vmem %s1849_s12, 64 }
  0x3e   :  { %p1730_p13 = scmp.ne.s32.totalorder %s1849_s12, %s1729_s16  ;;  %p1734_p0 = scmp.lt.s32.totalorder %s1849_s12, %s1849_s12 }
  0x3f   :  { %p1735_p1 = scmp.lt.s32.totalorder %s1733_s7, %s1729_s16 }
  0x41   :  { %p1736_p2 = por %p1735_p1, %p1734_p0 }
  0x43   :  { %p1737_p3 = pnand %p1736_p2, %p1730_p13 }
  0x45   :  { %1740 = shalt.err (!%p1737_p3)
}
  0x46   :  { %79 = dma.hbm_to_vmem [thread:$0]  %s2226_s9, 48, %s1849_s12, [#allocation8], %s1748_s28, %s1748_s28, %s1749_s29  }
  0x47   :  { %1741 = dma.done.wait [#allocation3], 384  }
  0x48   :  { %1742 = vsyncadd [#allocation3], 4294966912 }
  0x49   :  { %1743 = dma.done.wait [#allocation5], 96  }
  0x4a   :  { %1744 = vsyncadd [#allocation5], 4294967200 }
  0x4b   :  { %1745 = dma.done.wait [#allocation8], 48  }
  0x4c   :  { %1746 = vsyncadd [#allocation8], 4294967248  ;;  %v1755_v0 = vmov 0.0   ;;  %vm1756_vm0 = vmmov 0   ;;  %v1596_v1 = vld [vmem:[#allocation2] sm:$0xff]   ;;  %vm127_vm1 = vcmask 1041409  }
  0x4d   :  { %1493 = vmatprep.subr.bf16.mxu0 %v1755_v0  ;;  %1495 = vmatprep.mubr.msk.bf16.mxu0 %vm1756_vm0, %v1755_v0  ;;  %v1379_v2 = vld.sshfl [vmem:[%s2217_s0] sm:$0x3 pattern:$0x76325410]  ;;  %v1912_v7 = vld [vmem:[%s2218_s1 + $0x4] sm:$0x7] }
  0x4e   :  { %1499 = vmatprep.subr.bf16.mxu1 %v1755_v0  ;;  %1503 = vmatprep.mubr.msk.bf16.mxu1 %vm1756_vm0, %v1755_v0  ;;  %v1380_v3 = vld.sshfl [vmem:[%s2217_s0 + $0x2] sm:$0x3 pattern:$0x76325410]  ;;  %v1899_v4 = vunpack.c.l.b16 %v1379_v2  ;;  %vm136_vm2 = vcmask 130048   ;;  %v250_v11 = vpack.c.bf16 %v1912_v7, %v1912_v7  ;;  %vm205_vm3 = vcmask 261120  }
  0x4f   :  { %1494 = vmatpush3.bf16.msra.mxu0 %v1596_v1  ;;  %v1901_v5 = vunpack.c.l.b16 %v1380_v3  ;;  %v1907_v6 = vld [vmem:[%s2218_s1] sm:$0x7]  ;;  %v1598_v16 = vld [vmem:[%s2222_s5 + $0x8] sm:$0xff]   ;;  %v1378_v22 = vld [vmem:[#allocation4] ss:$0 sm:$0xff]  ;;  %v350_v55 = vrot.slane %v1912_v7, 7 }
  0x50   :  { %1507 = vmatprep.subr.bf16.mxu0 %v1755_v0  ;;  %v1597_v9 = vld [vmem:[%s2222_s5] sm:$0xff]   ;;  %v249_v10 = vpack.c.bf16 %v1907_v6, %v1907_v6  ;;  %v1926_v14 = vunpack.c.l.b16 %v250_v11  ;;  %v1600_v21 = vld [vmem:[%s2221_s4 + $0x8] sm:$0xff]   ;;  %v1387_v30 = vld [vmem:[#allocation6] ss:$0 sm:$0xff]  ;;  %v549_v50 = vrot.slane %v1899_v4, 1  ;;  %s1757_s29 = smov 96  }
  0x51   :  { %v126_v8 = vrot.slane %v1901_v5, 7  ;;  %v1599_v20 = vld [vmem:[%s2221_s4] sm:$0xff]   ;;  %v1601_v49 = vld [vmem:[#allocation2 + $0x8] sm:$0xff]   ;;  %v1602_v56 = vld [vmem:[%s2222_s5 + $0x10] sm:$0xff]   ;;  %v351_v63 = vsel %vm127_vm1, %v350_v55, %v1907_v6  ;;  %s1758_s12 = smov 32   ;;  %vm427_vm4 = vcmask 58368  }
  0x52   :  { %v1924_v13 = vunpack.c.l.b16 %v249_v10  ;;  %v266_v17 = vrot.slane %v1926_v14, 7  ;;  %1500 = vmatpush3.bf16.msra.mxu1 %v1599_v20  ;;  %v1383_v36 = vld [vmem:[%s2223_s6] ss:$0 sm:$0xff]  ;;  %v550_v51 = vsel %vm127_vm1, %v1901_v5, %v549_v50  ;;  %v1603_v60 = vld [vmem:[%s2222_s5 + $0x18] sm:$0xff]   ;;  %v1605_v62 = vld [vmem:[%s2225_s8 + $0x8] sm:$0xff]   ;;  %vm508_vm14 = vcmask 253952  }
  0x53   :  { %v128_v12 = vsel %vm127_vm1, %v126_v8, %v1899_v4  ;;  %1501 = vmatprep.subr.bf16.mxu1 %v1755_v0  ;;  %v551_v52 = vpack.c.b16 %v550_v51, %v550_v51  ;;  %v1604_v58 = vld [vmem:[%s2225_s8] sm:$0xff]   ;;  %v1608_v50 = vld [vmem:[#allocation2 + $0x10] sm:$0xff]   ;;  %v962_v51 = vrot.slane %v1899_v4, 2 }
  0x54   :  { %v129_v15 = vpack.c.b16 %v128_v12, %v128_v12  ;;  %v267_v18 = vsel %vm127_vm1, %v266_v17, %v1924_v13  ;;  %v684_v57 = vrot.slane %v1924_v13, 1 }
  0x55   :  { %v268_v19 = vpack.c.b16 %v267_v18, %v267_v18 }
  0x56   :  { %1496 = vmatmul.mubr.msk.bf16.vlgmr.msra.gmra.mrb[0].mxu0 %vm136_vm2, %v129_v15  ;;  %1502 = vmatpush3.bf16.msra.mxu1 %v1600_v21  ;;  %v685_v61 = vsel %vm127_vm1, %v1926_v14, %v684_v57  ;;  %v1098_v57 = vrot.slane %v1924_v13, 2 }
  0x57   :  { %1508 = vmatpush3.bf16.msra.mxu0 %v1597_v9  ;;  %1511 = vmatprep.mubr.msk.bf16.mxu0 %vm1756_vm0, %v1755_v0  ;;  %v686_v1 = vpack.c.b16 %v685_v61, %v685_v61 }
  0x58   :  { %1509 = vmatprep.subr.bf16.mxu0 %v1755_v0  ;;  %1515 = vmatprep.subr.bf16.mxu1 %v1755_v0 }
  0x5b   :  { %1510 = vmatpush3.bf16.msra.mxu0 %v1598_v16 }
  0x5c   :  { %1523 = vmatprep.subr.bf16.mxu0 %v1755_v0 }
  0x5e   :  { %1512 = vmatmul.mubr.msk.bf16.vlgmr.msra.gmra.mrb[4].mxu0 %vm205_vm3, %v268_v19  ;;  %v1414_v19 = vld [vmem:[#allocation6 + $0x1] ss:$0 sm:$0xff] }
  0x5f   :  { %1525 = vmatprep.mubr.msk.bf16.mxu0 %vm1756_vm0, %v1755_v0  ;;  %1524 = vmatpush3.bf16.msra.mxu0 %v1601_v49 }
  0x60   :  { %1537 = vmatprep.subr.bf16.mxu0 %v1755_v0 }
  0x66   :  { %1526 = vmatmul.mubr.msk.bf16.vlgmr.msra.gmra.mrb[8].mxu0 %vm136_vm2, %v551_v52  ;;  %v963_v52 = vrot.slane %v1901_v5, 1  ;;  %v1609_v5 = vld [vmem:[%s2222_s5 + $0x20] sm:$0xff]  }
  0x67   :  { %1541 = vmatprep.mubr.msk.bf16.mxu0 %vm1756_vm0, %v1755_v0  ;;  %1538 = vmatpush3.bf16.msra.mxu0 %v1602_v56 }
  0x68   :  { %1539 = vmatprep.subr.bf16.mxu0 %v1755_v0 }
  0x6b   :  { %1540 = vmatpush3.bf16.msra.mxu0 %v1603_v60  ;;  %v1610_v60 = vld [vmem:[%s2222_s5 + $0x28] sm:$0xff]  }
  0x6c   :  { %1553 = vmatprep.subr.bf16.mxu0 %v1755_v0 }
  0x6e   :  { %1542 = vmatmul.mubr.msk.bf16.vlgmr.msra.gmra.mrb[12].mxu0 %vm205_vm3, %v686_v1 }
  0x6f   :  { %1555 = vmatprep.mubr.msk.bf16.mxu0 %vm1756_vm0, %v1755_v0  ;;  %1554 = vmatpush3.bf16.msra.mxu0 %v1608_v50 }
  0x70   :  { %1567 = vmatprep.subr.bf16.mxu0 %v1755_v0 }
 0x129   :  { %v174_v23 = vpop.f32.mrb[0].mxu0 }
 0x12a   :  { %v175_v24 = vadd.f32 %v1378_v22, %v174_v23  ;;  %v1497_v25 = vpop.f32.mrb[1].mxu0 }
 0x12b   :  { %v177_v26 = vpop.f32.mrb[2].mxu0  ;;  %v1398_v25 = vld [vmem:[#allocation4 + $0x1] ss:$0 sm:$0xff] }
 0x12c   :  { %v180_v27 = vmax.f32 %v175_v24, 0.0  ;;  %v1498_v28 = vpop.f32.mrb[3].mxu0 }
 0x12e   :  { %v181_v29 = vpack.c.bf16 %v180_v27, %v180_v27  ;;  %v1606_v27 = vld [vmem:[%s2221_s4 + $0x10] sm:$0xff]  }
 0x130   :  { %1504 = vmatmul.mubr.msk.bf16.vlgmr.msra.gmra.mrb[0].mxu1 %vm205_vm3, %v181_v29 }
 0x131   :  { %v318_v31 = vpop.f32.mrb[4].mxu0  ;;  %1519 = vmatprep.mubr.msk.bf16.mxu1 %vm1756_vm0, %v1755_v0  ;;  %1516 = vmatpush3.bf16.msra.mxu1 %v1604_v58  ;;  %v1099_v58 = vrot.slane %v1926_v14, 1 }
 0x132   :  { %v319_v32 = vadd.f32 %v1387_v30, %v318_v31  ;;  %v1513_v33 = vpop.f32.mrb[5].mxu0  ;;  %1517 = vmatprep.subr.bf16.mxu1 %v1755_v0  ;;  %v1607_v30 = vld [vmem:[%s2221_s4 + $0x18] sm:$0xff]  }
 0x133   :  { %v321_v34 = vpop.f32.mrb[6].mxu0  ;;  %v1100_v61 = vsel %vm127_vm1, %v1099_v58, %v1098_v57 }
 0x134   :  { %v1514_v35 = vpop.f32.mrb[7].mxu0  ;;  %332 = vrot.lane.b32.xlu0 %v319_v32, %s1751_s3  ;;  %v1101_v13 = vpack.c.b16 %v1100_v61, %v1100_v61  ;;  %v1615_v61 = vld [vmem:[%s2225_s8 + $0x20] sm:$0xff]  }
 0x135   :  { %1518 = vmatpush3.bf16.msra.mxu1 %v1605_v62  ;;  %v1612_v62 = vld [vmem:[%s2225_s8 + $0x18] sm:$0xff]  }
 0x136   :  { %1529 = vmatprep.subr.bf16.mxu1 %v1755_v0 }
 0x139   :  { %v595_v2 = vpop.f32.mrb[8].mxu0 }
 0x13a   :  { %v1527_v3 = vpop.f32.mrb[9].mxu0  ;;  %v596_v26 = vadd.f32 %v1398_v25, %v595_v2 }
 0x13b   :  { %v598_v8 = vpop.f32.mrb[10].mxu0 }
 0x13c   :  { %v1528_v9 = vpop.f32.mrb[11].mxu0  ;;  %v601_v29 = vmax.f32 %v596_v26, 0.0  ;;  %v1613_v26 = vld [vmem:[%s2221_s4 + $0x20] sm:$0xff]  }
 0x13e   :  { %v602_v31 = vpack.c.bf16 %v601_v29, %v601_v29  ;;  %v1614_v29 = vld [vmem:[%s2221_s4 + $0x28] sm:$0xff]  }
 0x141   :  { %v736_v20 = vpop.f32.mrb[12].mxu0 }
 0x142   :  { %v737_v21 = vadd.f32 %v1414_v19, %v736_v20  ;;  %v1543_v22 = vpop.f32.mrb[13].mxu0 }
 0x143   :  { %v739_v23 = vpop.f32.mrb[14].mxu0 }
 0x144   :  { %v1544_v24 = vpop.f32.mrb[15].mxu0 }
 0x145   :  { %v1429_v24 = vld [vmem:[#allocation4 + $0x2] ss:$0 sm:$0xff] }
 0x1a6   :  { %v333_v46 = vpop.permute.xlu0 %332 }
 0x203   :  { %v243_v37 = vpop.f32.mrb[0].mxu1 }
 0x204   :  { %v244_v38 = vadd.f32 %v1383_v36, %v243_v37  ;;  %v1505_v39 = vpop.f32.mrb[1].mxu1  ;;  %v1406_v36 = vld [vmem:[%s2223_s6 + $0x1] ss:$0 sm:$0xff] }
 0x205   :  { %v246_v40 = vpop.f32.mrb[2].mxu1 }
 0x206   :  { %v324_v41 = vadd.f32 %v319_v32, %v244_v38  ;;  %v1506_v42 = vpop.f32.mrb[3].mxu1 }
 0x208   :  { %v1391_v43 = vmul.f32 -1.442695, %v324_v41 }
 0x20a   :  { %1617 = vpow2.f32 %v1391_v43 }
 0x214   :  { %v1618_v44 = vpop.eup %1617 }
 0x215   :  { %v328_v45 = vadd.f32 1.0, %v1618_v44 }
 0x217   :  { %1619 = vrcp.f32 %v328_v45 }
 0x221   :  { %v1620_v47 = vpop.eup %1619 }
 0x222   :  { %v335_v48 = vmul.f32 %v1620_v47, %v333_v46  ;;  %v342_v11 = vsub.f32 1.0, %v1620_v47 }
 0x224   :  { %337 = vrot.lane.b32.xlu0 %v335_v48, %s1751_s3  ;;  %v766_v48 = vrot.slane %v1907_v6, 1 }
 0x296   :  { %v338_v53 = vpop.permute.xlu0 %337 }
 0x297   :  { %v340_v54 = vadd.f32 %v338_v53, %v244_v38  ;;  %v767_v53 = vsel %vm127_vm1, %v1912_v7, %v766_v48  ;;  %v1181_v48 = vrot.slane %v1907_v6, 2 }
 0x299   :  { %1621 = vtanh.f32 %v340_v54  ;;  %v964_v54 = vsel %vm127_vm1, %v963_v52, %v962_v51  ;;  %v1392_v52 = vld [vmem:[#allocation7] ss:$0 sm:$0xff] }
 0x29a   :  { %v965_v55 = vpack.c.b16 %v964_v54, %v964_v54 }
 0x29c   :  { %1556 = vmatmul.mubr.msk.bf16.vlgmr.msra.gmra.mrb[16].mxu0 %vm136_vm2, %v965_v55 }
 0x29d   :  { %1571 = vmatprep.mubr.msk.bf16.mxu0 %vm1756_vm0, %v1755_v0  ;;  %1568 = vmatpush3.bf16.msra.mxu0 %v1609_v5 }
 0x29e   :  { %1569 = vmatprep.subr.bf16.mxu0 %v1755_v0 }
 0x2a1   :  { %1570 = vmatpush3.bf16.msra.mxu0 %v1610_v60 }
 0x2a3   :  { %v1622_v59 = vpop.eup %1621 }
 0x2a4   :  { %344 = vrot.lane.b32.xlu1 %v1622_v59, %s1757_s29  ;;  %v1611_v59 = vld [vmem:[%s2225_s8 + $0x10] sm:$0xff]   ;;  %1572 = vmatmul.mubr.msk.bf16.vlgmr.msra.gmra.mrb[20].mxu0 %vm205_vm3, %v1101_v13 }
 0x2a8   :  { %352 = vrot.lane.b32.xlu1 %v351_v63, %s1758_s12 }
 0x2ac   :  { %750 = vrot.lane.b32.xlu1 %v737_v21, %s1751_s3 }
 0x316   :  { %v345_v10 = vpop.permute.xlu1 %344 }
 0x317   :  { %v347_v15 = vmul.f32 %v345_v10, %v342_v11 }
 0x31a   :  { %v353_v12 = vpop.permute.xlu1 %352 }
 0x31b   :  { %v355_v16 = vmul.f32 %v1620_v47, %v353_v12 }
 0x31d   :  { %v1992_v17 = vadd.f32 %v355_v16, %v347_v15 }
 0x31e   :  { %v751_v46 = vpop.permute.xlu1 %750 }
 0x31f   :  { %v357_v18 = vpack.c.bf16 %v1992_v17, %v1992_v17 }
 0x321   :  { %370 = vrot.lane.b32.xlu0 %v357_v18, %s1757_s29  ;;  %v1445_v18 = vld [vmem:[#allocation6 + $0x2] ss:$0 sm:$0xff] }
 0x36f   :  { %v1009_v63 = vpop.f32.mrb[16].mxu0 }
 0x370   :  { %v1557_v1 = vpop.f32.mrb[17].mxu0  ;;  %v1010_v25 = vadd.f32 %v1429_v24, %v1009_v63 }
 0x371   :  { %v1012_v2 = vpop.f32.mrb[18].mxu0 }
 0x372   :  { %v1558_v3 = vpop.f32.mrb[19].mxu0 }
 0x377   :  { %v1151_v19 = vpop.f32.mrb[20].mxu0 }
 0x378   :  { %v1152_v20 = vadd.f32 %v1445_v18, %v1151_v19 }
 0x393   :  { %v371_v28 = vpop.permute.xlu0 %370 }
 0x394   :  { %1520 = vmatmul.mubr.msk.bf16.vlgmr.msra.gmra.mrb[4].mxu1 %vm205_vm3, %v371_v28  ;;  %v1015_v28 = vmax.f32 %v1010_v25, 0.0 }
 0x395   :  { %1530 = vmatpush3.bf16.msra.mxu1 %v1606_v27  ;;  %1533 = vmatprep.mubr.msk.bf16.mxu1 %vm1756_vm0, %v1755_v0 }
 0x396   :  { %1531 = vmatprep.subr.bf16.mxu1 %v1755_v0 }
 0x399   :  { %1532 = vmatpush3.bf16.msra.mxu1 %v1607_v30  ;;  %v1016_v30 = vpack.c.bf16 %v1015_v28, %v1015_v28 }
 0x39a   :  { %1545 = vmatprep.subr.bf16.mxu1 %v1755_v0 }
 0x39c   :  { %1534 = vmatmul.mubr.msk.bf16.vlgmr.msra.gmra.mrb[8].mxu1 %vm205_vm3, %v602_v31 }
 0x39d   :  { %1549 = vmatprep.mubr.msk.bf16.mxu1 %vm1756_vm0, %v1755_v0  ;;  %1546 = vmatpush3.bf16.msra.mxu1 %v1611_v59 }
 0x39e   :  { %1547 = vmatprep.subr.bf16.mxu1 %v1755_v0 }
 0x3a1   :  { %1548 = vmatpush3.bf16.msra.mxu1 %v1612_v62  ;;  %v1616_v62 = vld [vmem:[%s2225_s8 + $0x28] sm:$0xff]  }
 0x3a2   :  { %1559 = vmatprep.subr.bf16.mxu1 %v1755_v0 }
 0x467   :  { %v2012_v32 = vpop.f32.mrb[4].mxu1 }
 0x468   :  { %v1521_v33 = vpop.f32.mrb[5].mxu1 }
 0x469   :  { %v424_v34 = vpop.f32.mrb[6].mxu1 }
 0x46a   :  { %v1522_v35 = vpop.f32.mrb[7].mxu1 }
 0x46f   :  { %v665_v37 = vpop.f32.mrb[8].mxu1 }
 0x470   :  { %v666_v38 = vadd.f32 %v1406_v36, %v665_v37  ;;  %v1535_v39 = vpop.f32.mrb[9].mxu1  ;;  %v1437_v36 = vld [vmem:[%s2223_s6 + $0x2] ss:$0 sm:$0xff] }
 0x471   :  { %v668_v40 = vpop.f32.mrb[10].mxu1 }
 0x472   :  { %v742_v41 = vadd.f32 %v737_v21, %v666_v38  ;;  %v1536_v42 = vpop.f32.mrb[11].mxu1  ;;  %v1573_v21 = vpop.f32.mrb[21].mxu0 }
 0x473   :  { %v1154_v22 = vpop.f32.mrb[22].mxu0 }
 0x474   :  { %v1418_v43 = vmul.f32 -1.442695, %v742_v41  ;;  %v1574_v23 = vpop.f32.mrb[23].mxu0 }
 0x476   :  { %1623 = vpow2.f32 %v1418_v43 }
 0x480   :  { %v1624_v44 = vpop.eup %1623 }
 0x481   :  { %v746_v45 = vadd.f32 1.0, %v1624_v44 }
 0x483   :  { %1625 = vrcp.f32 %v746_v45 }
 0x48d   :  { %v1626_v47 = vpop.eup %1625 }
 0x48e   :  { %v753_v49 = vmul.f32 %v1626_v47, %v751_v46  ;;  %v760_v9 = vsub.f32 1.0, %v1626_v47 }
 0x490   :  { %755 = vrot.lane.b32.xlu0 %v753_v49, %s1751_s3  ;;  %v1182_v49 = vrot.slane %v1912_v7, 1  ;;  %v97_v7 = vlaneseq }
 0x492   :  { %v1183_v51 = vsel %vm127_vm1, %v1182_v49, %v1181_v48  ;;  %v2081_v5 = vand.u32 127, %v97_v7 }
 0x494   :  { %768 = vrot.lane.b32.xlu0 %v767_v53, %s1758_s12  ;;  %v422_v53 = vadd.f32 %v1392_v52, %v2012_v32  ;;  %vm467_vm10 = vcmp.eq.s32.totalorder %v2081_v5, 2  ;;  %vm466_vm11 = vcmp.eq.s32.totalorder %v2081_v5, 1  ;;  %vm464_vm12 = vcmp.eq.s32.totalorder %v2081_v5, 0 }
 0x496   :  { %v428_v54 = vsel %vm427_vm4, %v422_v53, -inf }
 0x498   :  { %1165 = vrot.lane.b32.xlu0 %v1152_v20, %s1751_s3 }
 0x502   :  { %v756_v56 = vpop.permute.xlu0 %755 }
 0x503   :  { %v758_v4 = vadd.f32 %v756_v56, %v666_v38 }
 0x505   :  { %1627 = vtanh.f32 %v758_v4 }
 0x506   :  { %v769_v8 = vpop.permute.xlu0 %768 }
 0x507   :  { %v771_v11 = vmul.f32 %v1626_v47, %v769_v8  ;;  %v1423_v8 = vld [vmem:[#allocation7 + $0x1] ss:$0 sm:$0xff] }
 0x50a   :  { %v1166_v46 = vpop.permute.xlu0 %1165 }
 0x50f   :  { %v1628_v14 = vpop.eup %1627 }
 0x510   :  { %762 = vrot.lane.b32.xlu1 %v1628_v14, %s1757_s29 }
 0x582   :  { %v763_v10 = vpop.permute.xlu1 %762 }
 0x583   :  { %v765_v12 = vmul.f32 %v763_v10, %v760_v9 }
 0x585   :  { %v2049_v15 = vadd.f32 %v771_v11, %v765_v12 }
 0x587   :  { %v773_v16 = vpack.c.bf16 %v2049_v15, %v2049_v15 }
 0x589   :  { %788 = vrot.lane.b32.xlu1 %v773_v16, %s1757_s29 }
 0x5fb   :  { %v789_v27 = vpop.permute.xlu1 %788 }
 0x5fc   :  { %1550 = vmatmul.mubr.msk.bf16.vlgmr.msra.gmra.mrb[12].mxu1 %vm205_vm3, %v789_v27  ;;  %v1454_v27 = vld [vmem:[#allocation7 + $0x2] ss:$0 sm:$0xff] }
 0x5fd   :  { %1560 = vmatpush3.bf16.msra.mxu1 %v1613_v26  ;;  %1563 = vmatprep.mubr.msk.bf16.mxu1 %vm1756_vm0, %v1755_v0 }
 0x5fe   :  { %1561 = vmatprep.subr.bf16.mxu1 %v1755_v0 }
 0x601   :  { %1562 = vmatpush3.bf16.msra.mxu1 %v1614_v29 }
 0x602   :  { %1575 = vmatprep.subr.bf16.mxu1 %v1755_v0 }
 0x604   :  { %1564 = vmatmul.mubr.msk.bf16.vlgmr.msra.gmra.mrb[16].mxu1 %vm205_vm3, %v1016_v30 }
 0x605   :  { %1579 = vmatprep.mubr.msk.bf16.mxu1 %vm1756_vm0, %v1755_v0  ;;  %1576 = vmatpush3.bf16.msra.mxu1 %v1615_v61 }
 0x606   :  { %1577 = vmatprep.subr.bf16.mxu1 %v1755_v0 }
 0x609   :  { %1578 = vmatpush3.bf16.msra.mxu1 %v1616_v62 }
 0x6cf   :  { %v839_v31 = vpop.f32.mrb[12].mxu1 }
 0x6d0   :  { %v1551_v33 = vpop.f32.mrb[13].mxu1  ;;  %v840_v9 = vadd.f32 %v1423_v8, %v839_v31 }
 0x6d1   :  { %v842_v34 = vpop.f32.mrb[14].mxu1 }
 0x6d2   :  { %v1552_v35 = vpop.f32.mrb[15].mxu1  ;;  %v845_v10 = vsel %vm427_vm4, %v840_v9, -inf }
 0x6d7   :  { %v1079_v37 = vpop.f32.mrb[16].mxu1 }
 0x6d8   :  { %v1080_v38 = vadd.f32 %v1437_v36, %v1079_v37  ;;  %v1565_v39 = vpop.f32.mrb[17].mxu1 }
 0x6d9   :  { %v1082_v40 = vpop.f32.mrb[18].mxu1 }
 0x6da   :  { %v1157_v41 = vadd.f32 %v1152_v20, %v1080_v38  ;;  %v1566_v42 = vpop.f32.mrb[19].mxu1 }
 0x6dc   :  { %v1449_v43 = vmul.f32 -1.442695, %v1157_v41 }
 0x6de   :  { %1629 = vpow2.f32 %v1449_v43 }
 0x6e8   :  { %v1630_v44 = vpop.eup %1629 }
 0x6e9   :  { %v1161_v45 = vadd.f32 1.0, %v1630_v44 }
 0x6eb   :  { %1631 = vrcp.f32 %v1161_v45 }
 0x6f5   :  { %v1632_v47 = vpop.eup %1631 }
 0x6f6   :  { %v1168_v50 = vmul.f32 %v1632_v47, %v1166_v46  ;;  %v1175_v13 = vsub.f32 1.0, %v1632_v47 }
 0x6f8   :  { %1170 = vrot.lane.b32.xlu1 %v1168_v50, %s1751_s3 }
 0x6fc   :  { %1184 = vrot.lane.b32.xlu1 %v1183_v51, %s1758_s12 }
 0x720   :  { %429 = vmax.xlane.f32.xlu1 %v428_v54  ;;  %v1759_v54 = vmov 1966171168  }
 0x76a   :  { %v1171_v55 = vpop.permute.xlu1 %1170 }
 0x76b   :  { %v1173_v56 = vadd.f32 %v1171_v55, %v1080_v38  ;;  %v473_v55 = vunpack.c.l.s4 %v1759_v54 }
 0x76d   :  { %1633 = vtanh.f32 %v1173_v56 }
 0x76e   :  { %v1185_v4 = vpop.permute.xlu1 %1184 }
 0x76f   :  { %v1187_v63 = vmul.f32 %v1632_v47, %v1185_v4  ;;  %v476_v4 = vshrl.u32 %v97_v7, 7 }
 0x777   :  { %v1634_v6 = vpop.eup %1633 }
 0x778   :  { %1177 = vrot.lane.b32.xlu0 %v1634_v6, %s1757_s29  ;;  %v474_v6 = vunpack.c.0.s8 %v473_v55 }
 0x7ad   :  { %v430_v57 = vpop.xlane.xlu1 %429 }
 0x7ae   :  { %vm447_vm5 = vcmp.ge.f32.partialorder %v422_v53, %v430_v57  ;;  %v431_v0 = vsub.f32 %v422_v53, %v430_v57 }
 0x7af   :  { %v448_v58 = vsel %vm447_vm5, %v2081_v5, 8 }
 0x7b0   :  { %v449_v32 = vsel %vm427_vm4, %v448_v58, 2147483647  ;;  %v432_v12 = vmul.f32 1.442695, %v431_v0 }
 0x7b1   :  { %v451_v59 = vshra.s32 %v449_v32, 16  ;;  %v450_v39 = vand.u32 65535, %v449_v32 }
 0x7b2   :  { %1635 = vpow2.f32 %v432_v12  ;;  %v2123_v12 = vsub.s32 0, %v476_v4 }
 0x7b3   :  { %v453_v60 = vcvt.s32.f32 %v451_v59  ;;  %v452_v41 = vcvt.s32.f32 %v450_v39 }
 0x7b5   :  { %454 = vmin.xlane.f32.xlu1 %v453_v60 }
 0x7bc   :  { %v1636_v20 = vpop.eup %1635 }
 0x7bd   :  { %v440_v23 = vmul.f32 %v1636_v20, %v431_v0  ;;  %v434_v40 = vsel %vm427_vm4, %v1636_v20, 0.0 }
 0x7bf   :  { %v441_v25 = vsel %vm427_vm4, %v440_v23, 0.0 }
 0x7ea   :  { %v1178_v14 = vpop.permute.xlu0 %1177 }
 0x7eb   :  { %v1180_v1 = vmul.f32 %v1178_v14, %v1175_v13 }
 0x7ed   :  { %v2092_v2 = vadd.f32 %v1187_v63, %v1180_v1 }
 0x7ef   :  { %v1189_v3 = vpack.c.bf16 %v2092_v2, %v2092_v2 }
 0x7f1   :  { %1204 = vrot.lane.b32.xlu0 %v1189_v3, %s1757_s29 }
 0x810   :  { %846 = vmax.xlane.f32.xlu0 %v845_v10 }
 0x842   :  { %v455_v38 = vpop.xlane.xlu1 %454 }
 0x843   :  { %vm456_vm7 = vcmp.eq.f32.partialorder %v453_v60, %v455_v38  ;;  %v2118_v60 = vsub.s32 %v474_v6, %v476_v4  ;;  %v461_v61 = vcvt.f32.s32 %v455_v38 }
 0x844   :  { %v457_v42 = vsel %vm456_vm7, %v452_v41, inf }
 0x845   :  { %v478_v1 = vrot.slane %v1992_v17, %v2118_v60  ;;  %v462_v3 = vshll.u32 %v461_v61, 16 }
 0x863   :  { %v1205_v11 = vpop.permute.xlu0 %1204 }
 0x864   :  { %1580 = vmatmul.mubr.msk.bf16.vlgmr.msra.gmra.mrb[20].mxu1 %vm205_vm3, %v1205_v11 }
 0x89d   :  { %v847_v16 = vpop.xlane.xlu0 %846 }
 0x89e   :  { %v848_v18 = vsub.f32 %v840_v9, %v847_v16  ;;  %vm864_vm6 = vcmp.ge.f32.partialorder %v840_v9, %v847_v16  ;;  %v892_v16 = vrot.slane %v2049_v15, %v2118_v60 }
 0x89f   :  { %v865_v26 = vsel %vm864_vm6, %v2081_v5, 8 }
 0x8a0   :  { %v849_v19 = vmul.f32 1.442695, %v848_v18  ;;  %v866_v28 = vsel %vm427_vm4, %v865_v26, 2147483647  ;;  %v479_v26 = vcombine.high %v478_v1, %v478_v1 }
 0x8a1   :  { %v868_v34 = vshra.s32 %v866_v28, 16  ;;  %v867_v44 = vand.u32 65535, %v866_v28 }
 0x8a2   :  { %1637 = vpow2.f32 %v849_v19  ;;  %v486_v19 = vrot.slane %v478_v1, %v2118_v60 }
 0x8a3   :  { %v870_v37 = vcvt.s32.f32 %v868_v34  ;;  %v869_v50 = vcvt.s32.f32 %v867_v44 }
 0x8a4   :  { %v497_v23 = vrot.slane %v486_v19, %v2123_v12 }
 0x8ac   :  { %v1638_v21 = vpop.eup %1637 }
 0x8ad   :  { %v851_v22 = vsel %vm427_vm4, %v1638_v21, 0.0  ;;  %v857_v24 = vmul.f32 %v1638_v21, %v848_v18 }
 0x8ae   :  { %852 = vadd.xlane.f32.xlu1 %v851_v22  ;;  %v893_v22 = vcombine.high %v892_v16, %v892_v16 }
 0x8af   :  { %v858_v57 = vsel %vm427_vm4, %v857_v24, 0.0  ;;  %v900_v24 = vrot.slane %v892_v16, %v2118_v60 }
 0x8b1   :  { %v911_v28 = vrot.slane %v900_v24, %v2123_v12 }
 0x8b2   :  { %442 = vadd.xlane.f32.xlu1 %v441_v25 }
 0x937   :  { %v1255_v29 = vpop.f32.mrb[20].mxu1 }
 0x938   :  { %v1256_v30 = vadd.f32 %v1454_v27, %v1255_v29  ;;  %v1581_v31 = vpop.f32.mrb[21].mxu1  ;;  %v907_v29 = vrot.slane %v893_v22, %v2118_v60 }
 0x939   :  { %v1258_v33 = vpop.f32.mrb[22].mxu1 }
 0x93a   :  { %v1582_v35 = vpop.f32.mrb[23].mxu1  ;;  %v1261_v36 = vsel %vm427_vm4, %v1256_v30, -inf  ;;  %v915_v31 = vrot.slane %v907_v29, %v2123_v12 }
 0x93b   :  { %1262 = vmax.xlane.f32.xlu0 %v1261_v36  ;;  %v853_v58 = vpop.xlane.xlu1 %852  ;;  %v1308_v35 = vrot.slane %v2092_v2, %v2118_v60 }
 0x93d   :  { %v1309_v36 = vcombine.high %v1308_v35, %v1308_v35 }
 0x93f   :  { %871 = vmin.xlane.f32.xlu0 %v870_v37  ;;  %v443_v8 = vpop.xlane.xlu1 %442 }
 0x943   :  { %435 = vadd.xlane.f32.xlu0 %v434_v40 }
 0x947   :  { %458 = vmin.xlane.f32.xlu0 %v457_v42 }
 0x9c8   :  { %v1263_v43 = vpop.xlane.xlu0 %1262 }
 0x9c9   :  { %v1264_v45 = vsub.f32 %v1256_v30, %v1263_v43  ;;  %vm1280_vm8 = vcmp.ge.f32.partialorder %v1256_v30, %v1263_v43  ;;  %v493_v30 = vrot.slane %v479_v26, %v2118_v60 }
 0x9ca   :  { %v1281_v46 = vsel %vm1280_vm8, %v2081_v5, 8 }
 0x9cb   :  { %v1265_v47 = vmul.f32 1.442695, %v1264_v45  ;;  %v2107_v48 = vsel %vm427_vm4, %v1281_v46, 2147483647  ;;  %v501_v33 = vrot.slane %v493_v30, %v2123_v12 }
 0x9cc   :  { %v2109_v49 = vpop.xlane.xlu0 %871  ;;  %v1284_v51 = vshra.s32 %v2107_v48, 16  ;;  %v1283_v39 = vand.u32 65535, %v2107_v48 }
 0x9cd   :  { %1639 = vpow2.f32 %v1265_v47  ;;  %vm873_vm9 = vcmp.eq.f32.partialorder %v870_v37, %v2109_v49  ;;  %v1323_v37 = vrot.slane %v1309_v36, %v2118_v60  ;;  %v878_v40 = vcvt.f32.s32 %v2109_v49 }
 0x9ce   :  { %v874_v52 = vsel %vm873_vm9, %v869_v50, inf  ;;  %v2113_v53 = vcvt.s32.f32 %v1284_v51  ;;  %v1285_v43 = vcvt.s32.f32 %v1283_v39 }
 0x9cf   :  { %875 = vmin.xlane.f32.xlu0 %v874_v52  ;;  %v1331_v38 = vrot.slane %v1323_v37, %v2123_v12  ;;  %v879_v46 = vshll.u32 %v878_v40, 16 }
 0x9d0   :  { %1287 = vmin.xlane.f32.xlu1 %v2113_v53  ;;  %v436_v56 = vpop.xlane.xlu0 %435 }
 0x9d1   :  { %1641 = vlog2.f32 %v436_v56 }
 0x9d2   :  { %1643 = vrcp.f32 %v436_v56 }
 0x9d3   :  { %1645 = vlog2.f32 %v853_v58 }
 0x9d4   :  { %859 = vadd.xlane.f32.xlu1 %v858_v57  ;;  %v459_v32 = vpop.xlane.xlu0 %458  ;;  %1647 = vrcp.f32 %v853_v58 }
 0x9d5   :  { %v460_v14 = vcvt.f32.s32 %v459_v32 }
 0x9d7   :  { %v1640_v59 = vpop.eup %1639  ;;  %v463_v11 = vadd.s32 %v462_v3, %v460_v14 }
 0x9d8   :  { %v1267_v62 = vsel %vm427_vm4, %v1640_v59, 0.0  ;;  %v1273_v13 = vmul.f32 %v1640_v59, %v1264_v45 }
 0x9d9   :  { %1268 = vadd.xlane.f32.xlu0 %v1267_v62  ;;  %v465_v17 = vcvt.s32.f32 %v463_v11 }
 0x9da   :  { %v1274_v34 = vsel %vm427_vm4, %v1273_v13, 0.0  ;;  %v1316_v13 = vrot.slane %v1308_v35, %v2118_v60 }
 0x9db   :  { %v1642_v63 = vpop.eup %1641 }
 0x9dc   :  { %v1644_v7 = vpop.eup %1643  ;;  %v438_v9 = vmul.f32 0.6931472, %v1642_v63  ;;  %v1327_v14 = vrot.slane %v1316_v13, %v2123_v12 }
 0x9dd   :  { %v444_v10 = vmul.f32 %v1644_v7, %v443_v8  ;;  %v1646_v44 = vpop.eup %1645 }
 0x9de   :  { %v446_v0 = vsub.f32 0.0, %v438_v9  ;;  %v1648_v47 = vpop.eup %1647  ;;  %v855_v50 = vmul.f32 0.6931472, %v1646_v44 }
 0x9df   :  { %v445_v18 = vsub.f32 %v438_v9, %v444_v10 }
 0x9e0   :  { %v863_v48 = vsub.f32 0.0, %v855_v50 }
 0x9e1   :  { %v468_v20 = vsel %vm467_vm10, %v445_v18, 0.0 }
 0x9e2   :  { %v469_v21 = vsel %vm466_vm11, %v446_v0, %v468_v20 }
 0x9e3   :  { %v470_v15 = vsel %vm464_vm12, %v465_v17, %v469_v21 }
 0x9e4   :  { %v518_v25 = vrot.slane %v470_v15, %v2118_v60 }
 0x9e5   :  { %502 = vrot.lane.b32.xlu1 %v497_v23, %s1757_s29 }
 0x9e6   :  { %v519_v27 = vcombine.high %v518_v25, %v518_v25  ;;  %1396 = vst.sshfl [vmem:[%s2228_s11] sm:$0x1 pattern:$0x73625140] %v518_v25 }
 0x9e8   :  { %1397 = vst.sshfl [vmem:[%s2228_s11 + $0x4] sm:$0x1 pattern:$0x73625140] %v519_v27 }
 0x9e9   :  { %916 = vrot.lane.b32.xlu1 %v911_v28, %s1757_s29 }
 0x9ed   :  { %918 = vrot.lane.b32.xlu1 %v915_v31, %s1757_s29 }
 0x9ef   :  { %504 = vrot.lane.b32.xlu0 %v501_v33, %s1757_s29 }
 0xa11   :  { %1275 = vadd.xlane.f32.xlu1 %v1274_v34 }
 0xa22   :  { %1334 = vrot.lane.b32.xlu1 %v1331_v38, %s1757_s29 }
 0xa5c   :  { %v876_v41 = vpop.xlane.xlu0 %875 }
 0xa5d   :  { %v1288_v42 = vpop.xlane.xlu1 %1287  ;;  %v877_v45 = vcvt.f32.s32 %v876_v41 }
 0xa5e   :  { %vm1289_vm13 = vcmp.eq.f32.partialorder %v2113_v53, %v1288_v42  ;;  %v1294_v16 = vcvt.f32.s32 %v1288_v42 }
 0xa5f   :  { %v1290_v2 = vsel %vm1289_vm13, %v1285_v43, inf  ;;  %v880_v52 = vadd.s32 %v879_v46, %v877_v45 }
 0xa60   :  { %1291 = vmin.xlane.f32.xlu0 %v1290_v2  ;;  %v1295_v19 = vshll.u32 %v1294_v16, 16 }
 0xa61   :  { %v860_v51 = vpop.xlane.xlu1 %859  ;;  %v881_v49 = vcvt.s32.f32 %v880_v52 }
 0xa62   :  { %v861_v54 = vmul.f32 %v1648_v47, %v860_v51 }
 0xa64   :  { %v862_v55 = vsub.f32 %v855_v50, %v861_v54 }
 0xa65   :  { %v503_v56 = vpop.permute.xlu1 %502 }
 0xa66   :  { %v882_v6 = vsel %vm467_vm10, %v862_v55, 0.0  ;;  %509 = vst.msk [vmem:[%s2227_s10] sm:$0x1] %vm508_vm14, %v503_v56  ;;  %v1269_v53 = vpop.xlane.xlu0 %1268 }
 0xa67   :  { %v883_v4 = vsel %vm466_vm11, %v863_v48, %v882_v6  ;;  %1649 = vlog2.f32 %v1269_v53 }
 0xa68   :  { %v884_v57 = vsel %vm464_vm12, %v881_v49, %v883_v4  ;;  %1651 = vrcp.f32 %v1269_v53 }
 0xa69   :  { %v931_v58 = vrot.slane %v884_v57, %v2118_v60  ;;  %v917_v32 = vpop.permute.xlu1 %916 }
 0xa6a   :  { %922 = vst.msk [vmem:[%s2227_s10 + $0x1] sm:$0x1] %vm508_vm14, %v917_v32  ;;  %v505_v59 = vpop.permute.xlu0 %504 }
 0xa6b   :  { %v932_v61 = vcombine.high %v931_v58, %v931_v58  ;;  %1427 = vst.sshfl [vmem:[%s2228_s11 + $0x1] sm:$0x1 pattern:$0x73625140] %v931_v58  ;;  %510 = vst.msk [vmem:[%s2227_s10 + $0x4] sm:$0x1] %vm508_vm14, %v505_v59 }
 0xa6d   :  { %1428 = vst.sshfl [vmem:[%s2228_s11 + $0x5] sm:$0x1 pattern:$0x73625140] %v932_v61  ;;  %v919_v62 = vpop.permute.xlu1 %918 }
 0xa6e   :  { %923 = vst.msk [vmem:[%s2227_s10 + $0x5] sm:$0x1] %vm508_vm14, %v919_v62 }
 0xa71   :  { %v1650_v63 = vpop.eup %1649 }
 0xa72   :  { %v1652_v1 = vpop.eup %1651  ;;  %v1271_v7 = vmul.f32 0.6931472, %v1650_v63 }
 0xa74   :  { %v1279_v10 = vsub.f32 0.0, %v1271_v7 }
 0xa76   :  { %1332 = vrot.lane.b32.xlu0 %v1327_v14, %s1757_s29 }
 0xa9e   :  { %v1276_v3 = vpop.xlane.xlu1 %1275 }
 0xa9f   :  { %v1277_v8 = vmul.f32 %v1652_v1, %v1276_v3 }
 0xaa1   :  { %v1278_v9 = vsub.f32 %v1271_v7, %v1277_v8 }
 0xaa2   :  { %v1335_v11 = vpop.permute.xlu1 %1334 }
 0xaa3   :  { %v1298_v0 = vsel %vm467_vm10, %v1278_v9, 0.0  ;;  %1339 = vst.msk [vmem:[%s2227_s10 + $0x6] sm:$0x1] %vm508_vm14, %v1335_v11 }
 0xaa4   :  { %v1299_v12 = vsel %vm466_vm11, %v1279_v10, %v1298_v0 }
 0xaed   :  { %v1292_v18 = vpop.xlane.xlu0 %1291 }
 0xaee   :  { %v1293_v17 = vcvt.f32.s32 %v1292_v18 }
 0xaf0   :  { %v1296_v20 = vadd.s32 %v1295_v19, %v1293_v17 }
 0xaf1   :  { %v1333_v21 = vpop.permute.xlu0 %1332 }
 0xaf2   :  { %v1297_v22 = vcvt.s32.f32 %v1296_v20  ;;  %1338 = vst.msk [vmem:[%s2227_s10 + $0x2] sm:$0x1] %vm508_vm14, %v1333_v21 }
 0xaf4   :  { %v1300_v23 = vsel %vm464_vm12, %v1297_v22, %v1299_v12 }
 0xaf5   :  { %v1347_v24 = vrot.slane %v1300_v23, %v2118_v60 }
 0xaf7   :  { %v1348_v15 = vcombine.high %v1347_v24, %v1347_v24  ;;  %1458 = vst.sshfl [vmem:[%s2228_s11 + $0x2] sm:$0x1 pattern:$0x73625140] %v1347_v24 }
 0xaf9   :  { %1459 = vst.sshfl [vmem:[%s2228_s11 + $0x6] sm:$0x1 pattern:$0x73625140] %v1348_v15 }
 0xafa   :  { %1375 = vsyncpa [#allocation3], 1 }
 0xafb   :  { %1376 = vsyncpa [#allocation5], 1 }
 0xafc   :  { %1377 = vsyncpa [#allocation8], 1 }

</bundles_post_ra>
